<compile_context>
chip_gen: v7x
topology: tpu7x:2x2x1
jax: 0.10.0
libtpu: 0.0.40
codegen_flags: <defaults>
</compile_context>

<pallas_src>
import jax
import jax.numpy as jnp
import numpy as np
from jax import lax
from jax.experimental import pallas as pl
from jax.experimental.pallas import tpu as pltpu

NUM_LAYERS = 3
LEAKY_SLOPE = 0.01  # PyTorch nn.LeakyReLU default


def _lstm_head_kernel(x_ref, w_ih0_ref, w_ih12_ref, w_hh_ref, b_ref,
                      hw1_ref, hb1_ref, hw2_ref, hb2_ref, hw3_ref, hb3_ref,
                      out_ref, xproj_ref, h3_ref):
    """Single program: wavefront-scheduled recurrence + batched head."""
    T = x_ref.shape[0]
    H = w_hh_ref.shape[1]

    # ---- One-time setup (outside the serial loop) -----------------------------
    # Layer-0 input projection for ALL timesteps as one M=T MXU matmul
    # (bias of layer 0 folded in here).
    xproj_ref[...] = (
        jnp.dot(x_ref[...], w_ih0_ref[...], preferred_element_type=jnp.float32)
        + b_ref[pl.ds(0, 1), :])

    # Hoist loop-invariant weight loads out of the recurrence.
    w_hh0 = w_hh_ref[0]
    w_hh1 = w_hh_ref[1]
    w_hh2 = w_hh_ref[2]
    w_ih1 = w_ih12_ref[0]
    w_ih2 = w_ih12_ref[1]
    # Per-layer bias rows stacked once (layer 0's bias already lives in xproj).
    b_rows = jnp.concatenate(
        [jnp.zeros((1, 4 * H), jnp.float32),
         b_ref[pl.ds(1, 1), :],
         b_ref[pl.ds(2, 1), :]], axis=0)                        # (3, 4H)

    layer_idx = lax.broadcasted_iota(jnp.int32, (NUM_LAYERS, 1), 0)  # (3, 1)

    # ---- Wavefront-scheduled recurrence ---------------------------------------
    # Step s: layer l processes timestep t = s - l.  Layer l's input at t is
    # layer (l-1)'s output at t, which is exactly the carry h[l-1] produced at
    # step s-1.  Inactive layers (t < 0 or t >= T) keep their old state.
    def step(s, carry):
        h, c = carry                                            # (3, H) each, in vregs

        # All matmuls depend only on the previous carry -> issued up front so
        # the MXU overlaps the gate chain.
        t0 = jnp.minimum(s, T - 1)                              # clamp (masked when s >= T)
        z0 = xproj_ref[pl.ds(t0, 1), :] + jnp.dot(
            h[0:1], w_hh0, preferred_element_type=jnp.float32)
        z1 = (jnp.dot(h[0:1], w_ih1, preferred_element_type=jnp.float32)
              + jnp.dot(h[1:2], w_hh1, preferred_element_type=jnp.float32))
        z2 = (jnp.dot(h[1:2], w_ih2, preferred_element_type=jnp.float32)
              + jnp.dot(h[2:3], w_hh2, preferred_element_type=jnp.float32))
        z = jnp.concatenate([z0, z1, z2], axis=0) + b_rows      # (3, 4H)

        # Two EUP passes over the whole (3, 4H) tile instead of 4 per layer.
        sz = jax.nn.sigmoid(z)
        tz = jnp.tanh(z)
        i_g = sz[:, 0:H]
        f_g = sz[:, H:2 * H]
        o_g = sz[:, 3 * H:4 * H]
        g_g = tz[:, 2 * H:3 * H]

        c_new = f_g * c + i_g * g_g                             # (3, H)
        h_new = o_g * jnp.tanh(c_new)                           # (3, H)

        # Wavefront activity mask: layer l live iff 0 <= s - l < T.
        active = (s >= layer_idx) & (s < T + layer_idx)         # (3, 1)
        c = jnp.where(active, c_new, c)
        h = jnp.where(active, h_new, h)

        # Stash top-layer output (timestep s-2) for the batched head.  The
        # clamped store for s < 2 writes zeros to row 0 and is overwritten at
        # s == 2, avoiding a branch on the serial chain.
        h3_ref[pl.ds(jnp.maximum(s - (NUM_LAYERS - 1), 0), 1), :] = h[2:3]
        return h, c

    h0 = jnp.zeros((NUM_LAYERS, H), jnp.float32)
    c0 = jnp.zeros((NUM_LAYERS, H), jnp.float32)
    n_steps = T + NUM_LAYERS - 1
    # Cap the unroll once the trip count grows (instruction-memory / compile time).
    lax.fori_loop(0, n_steps, step, (h0, c0),
                  unroll=True if n_steps <= 16 else 8)

    # ---- Batched MLP head (off the recurrence critical path) ------------------
    y = (jnp.dot(h3_ref[...], hw1_ref[...], preferred_element_type=jnp.float32)
         + hb1_ref[...])
    y = jnp.where(y > 0, y, LEAKY_SLOPE * y)
    y = (jnp.dot(y, hw2_ref[...], preferred_element_type=jnp.float32)
         + hb2_ref[...])
    y = jnp.where(y > 0, y, LEAKY_SLOPE * y)
    y = (jnp.dot(y, hw3_ref[...], preferred_element_type=jnp.float32)
         + hb3_ref[...])
    out_ref[...] = jax.nn.sigmoid(y)                            # single (T, 1) store


def resnet_lstm_forward(x, params):
    """x: any shape (T, ...); flattened (PyTorch nn.Flatten) to (T, F)."""
    T = x.shape[0]
    xf = x.reshape(T, -1).astype(jnp.float32)            # nn.Flatten (glue)
    F = xf.shape[1]
    H = params["w_hh"].shape[1]
    H2, H4 = H // 2, H // 4

    const3 = lambda i: (0, 0, 0)
    const2 = lambda i: (0, 0)

    grid_spec = pltpu.PrefetchScalarGridSpec(
        num_scalar_prefetch=0,
        grid=(1,),                                        # single program; loop lives inside
        in_specs=[
            pl.BlockSpec((T, F), const2),                  # x (fully resident)
            pl.BlockSpec((F, 4 * H), const2),              # w_ih layer 0
            pl.BlockSpec((2, H, 4 * H), const3),           # w_ih layers 1,2
            pl.BlockSpec((NUM_LAYERS, H, 4 * H), const3),  # w_hh all layers
            pl.BlockSpec((NUM_LAYERS, 4 * H), const2),     # b_ih + b_hh fused
            pl.BlockSpec((H, H2), const2),                 # head linear 1
            pl.BlockSpec((1, H2), const2),
            pl.BlockSpec((H2, H4), const2),                # head linear 2
            pl.BlockSpec((1, H4), const2),
            pl.BlockSpec((H4, 1), const2),                 # head linear 3
            pl.BlockSpec((1, 1), const2),
        ],
        out_specs=pl.BlockSpec((T, 1), const2),
        scratch_shapes=[
            pltpu.VMEM((T, 4 * H), jnp.float32),           # precomputed x @ w_ih0 + b0
            pltpu.VMEM((T, H), jnp.float32),               # top-layer h for batched head
        ],
    )

    return pl.pallas_call(
        _lstm_head_kernel,
        out_shape=jax.ShapeDtypeStruct((T, 1), jnp.float32),
        grid_spec=grid_spec,
        compiler_params=pltpu.CompilerParams(
            dimension_semantics=("arbitrary",)),
    )(xf, params["w_ih0"], params["w_ih12"], params["w_hh"], params["b"],
      params["hw1"], params["hb1"], params["hw2"], params["hb2"],
      params["hw3"], params["hb3"])


def make_params(key, input_size, hidden_size):
    """Deterministic synthetic init (uniform, PyTorch-style scale)."""
    H = hidden_size
    k = 1.0 / np.sqrt(H)
    keys = jax.random.split(key, 12)
    u = lambda kk, shape, s: jax.random.uniform(kk, shape, jnp.float32, -s, s)
    return {
        "w_ih0": u(keys[0], (input_size, 4 * H), k),
        "w_ih12": u(keys[1], (2, H, 4 * H), k),
        "w_hh": u(keys[2], (NUM_LAYERS, H, 4 * H), k),
        "b": u(keys[3], (NUM_LAYERS, 4 * H), k),           # b_ih + b_hh folded together
        "hw1": u(keys[4], (H, H // 2), 1.0 / np.sqrt(H)),
        "hb1": u(keys[5], (1, H // 2), 1.0 / np.sqrt(H)),
        "hw2": u(keys[6], (H // 2, H // 4), 1.0 / np.sqrt(H // 2)),
        "hb2": u(keys[7], (1, H // 4), 1.0 / np.sqrt(H // 2)),
        "hw3": u(keys[8], (H // 4, 1), 1.0 / np.sqrt(H // 4)),
        "hb3": u(keys[9], (1, 1), 1.0 / np.sqrt(H // 4)),
    }


def reference_forward(x, params):
    """Pure-JAX reference mirroring PyTorch eval-mode semantics."""
    T = x.shape[0]
    xf = x.reshape(T, -1).astype(jnp.float32)
    H = params["w_hh"].shape[1]
    h = [jnp.zeros((1, H), jnp.float32) for _ in range(NUM_LAYERS)]
    c = [jnp.zeros((1, H), jnp.float32) for _ in range(NUM_LAYERS)]
    outs = []
    for t in range(T):
        inp = xf[t:t + 1]
        for l in range(NUM_LAYERS):
            w_ih = params["w_ih0"] if l == 0 else params["w_ih12"][l - 1]
            z = inp @ w_ih + h[l] @ params["w_hh"][l] + params["b"][l:l + 1]
            i_g = jax.nn.sigmoid(z[:, 0:H])
            f_g = jax.nn.sigmoid(z[:, H:2 * H])
            g_g = jnp.tanh(z[:, 2 * H:3 * H])
            o_g = jax.nn.sigmoid(z[:, 3 * H:4 * H])
            c[l] = f_g * c[l] + i_g * g_g
            h[l] = o_g * jnp.tanh(c[l])
            inp = h[l]
        y = inp @ params["hw1"] + params["hb1"]
        y = jnp.where(y > 0, y, LEAKY_SLOPE * y)
        y = y @ params["hw2"] + params["hb2"]
        y = jnp.where(y > 0, y, LEAKY_SLOPE * y)
        y = y @ params["hw3"] + params["hb3"]
        outs.append(jax.nn.sigmoid(y))
    return jnp.concatenate(outs, axis=0)


if __name__ == "__main__":
    seq_len = 8          # becomes the (unbatched) sequence length after Flatten
    input_size = 16      # per-step features after flatten (4*4 here)
    hidden_size = 32

    key = jax.random.PRNGKey(0)
    pkey, xkey = jax.random.split(key)
    params = make_params(pkey, input_size, hidden_size)
    x = jax.random.normal(xkey, (seq_len, 4, 4), dtype=jnp.float32)

    out = resnet_lstm_forward(x, params)
    out = jax.block_until_ready(out)

    ref = jax.block_until_ready(reference_forward(x, params))
    assert out.shape == (seq_len, 1), out.shape
    np.testing.assert_allclose(np.asarray(out), np.asarray(ref), rtol=1e-3, atol=1e-4)

    print("KERNEL_OK")
</pallas_src>

<mosaic_0001>
module attributes {stable_mosaic.version = 11 : i64} {
  func.func @_lstm_head_kernel(%arg0: i32, %arg1: memref<8x16xf32, #tpu.memory_space<vmem>>, %arg2: memref<16x128xf32, #tpu.memory_space<vmem>>, %arg3: memref<2x32x128xf32, #tpu.memory_space<vmem>>, %arg4: memref<3x32x128xf32, #tpu.memory_space<vmem>>, %arg5: memref<3x128xf32, #tpu.memory_space<vmem>>, %arg6: memref<32x16xf32, #tpu.memory_space<vmem>>, %arg7: memref<1x16xf32, #tpu.memory_space<vmem>>, %arg8: memref<16x8xf32, #tpu.memory_space<vmem>>, %arg9: memref<1x8xf32, #tpu.memory_space<vmem>>, %arg10: memref<8x1xf32, #tpu.memory_space<vmem>>, %arg11: memref<1x1xf32, #tpu.memory_space<vmem>>, %arg12: memref<8x1xf32, #tpu.memory_space<vmem>>, %arg13: memref<8x128xf32, #tpu.memory_space<vmem>>, %arg14: memref<8x32xf32, #tpu.memory_space<vmem>>) attributes {dimension_semantics = [#tpu.dimension_semantics<arbitrary>], iteration_bounds = array<i64: 1>, scalar_prefetch = 0 : i64, scratch_operands = 2 : i64, tpu.core_type = #tpu.core_type<tc>, window_params = [{pipeline_mode = #tpu.pipeline_mode<synchronous>, transform_indices = @transform_0, window_bounds = array<i64: 8, 16>}, {pipeline_mode = #tpu.pipeline_mode<synchronous>, transform_indices = @transform_1, window_bounds = array<i64: 16, 128>}, {pipeline_mode = #tpu.pipeline_mode<synchronous>, transform_indices = @transform_2, window_bounds = array<i64: 2, 32, 128>}, {pipeline_mode = #tpu.pipeline_mode<synchronous>, transform_indices = @transform_3, window_bounds = array<i64: 3, 32, 128>}, {pipeline_mode = #tpu.pipeline_mode<synchronous>, transform_indices = @transform_4, window_bounds = array<i64: 3, 128>}, {pipeline_mode = #tpu.pipeline_mode<synchronous>, transform_indices = @transform_5, window_bounds = array<i64: 32, 16>}, {pipeline_mode = #tpu.pipeline_mode<synchronous>, transform_indices = @transform_6, window_bounds = array<i64: 1, 16>}, {pipeline_mode = #tpu.pipeline_mode<synchronous>, transform_indices = @transform_7, window_bounds = array<i64: 16, 8>}, {pipeline_mode = #tpu.pipeline_mode<synchronous>, transform_indices = @transform_8, window_bounds = array<i64: 1, 8>}, {pipeline_mode = #tpu.pipeline_mode<synchronous>, transform_indices = @transform_9, window_bounds = array<i64: 8, 1>}, {pipeline_mode = #tpu.pipeline_mode<synchronous>, transform_indices = @transform_10, window_bounds = array<i64: 1, 1>}, {pipeline_mode = #tpu.pipeline_mode<synchronous>, transform_indices = @transform_11, window_bounds = array<i64: 8, 1>}]} {
    %c0 = arith.constant 0 : index
    %c0_0 = arith.constant 0 : index
    %0 = vector.load %arg1[%c0, %c0_0] : memref<8x16xf32, #tpu.memory_space<vmem>>, vector<8x16xf32>
    %c0_1 = arith.constant 0 : index
    %c0_2 = arith.constant 0 : index
    %1 = vector.load %arg2[%c0_1, %c0_2] : memref<16x128xf32, #tpu.memory_space<vmem>>, vector<16x128xf32>
    %cst = arith.constant dense<0.000000e+00> : vector<8x128xf32>
    %2 = tpu.matmul %0, %1, %cst {dimension_numbers = #tpu.dot_dimension_numbers<[1], [0], [0], [1], [0, 0, 1, 1], [], []>} : vector<8x16xf32>, vector<16x128xf32>, vector<8x128xf32> -> vector<8x128xf32>
    %c0_3 = arith.constant 0 : index
    %c0_4 = arith.constant 0 : index
    %3 = vector.load %arg5[%c0_3, %c0_4] : memref<3x128xf32, #tpu.memory_space<vmem>>, vector<1x128xf32>
    %4 = vector.broadcast %3 : vector<1x128xf32> to vector<8x128xf32>
    %5 = arith.addf %2, %4 : vector<8x128xf32>
    %c0_5 = arith.constant 0 : index
    %c0_6 = arith.constant 0 : index
    %6 = vector.load %arg13[%c0_5, %c0_6] : memref<8x128xf32, #tpu.memory_space<vmem>>, vector<8x128xf32>
    tpu.vector_store %arg13[%c0_5, %c0_6], %5 {strides = array<i32>} : memref<8x128xf32, #tpu.memory_space<vmem>>, vector<8x128xf32>,
    %c0_7 = arith.constant 0 : index
    %c0_8 = arith.constant 0 : index
    %c0_9 = arith.constant 0 : index
    %7 = vector.load %arg4[%c0_7, %c0_8, %c0_9] : memref<3x32x128xf32, #tpu.memory_space<vmem>>, vector<1x32x128xf32>
    %8 = vector.shape_cast %7 : vector<1x32x128xf32> to vector<32x128xf32>
    %c1 = arith.constant 1 : index
    %c0_10 = arith.constant 0 : index
    %c0_11 = arith.constant 0 : index
    %9 = vector.load %arg4[%c1, %c0_10, %c0_11] : memref<3x32x128xf32, #tpu.memory_space<vmem>>, vector<1x32x128xf32>
    %10 = vector.shape_cast %9 : vector<1x32x128xf32> to vector<32x128xf32>
    %c2 = arith.constant 2 : index
    %c0_12 = arith.constant 0 : index
    %c0_13 = arith.constant 0 : index
    %11 = vector.load %arg4[%c2, %c0_12, %c0_13] : memref<3x32x128xf32, #tpu.memory_space<vmem>>, vector<1x32x128xf32>
    %12 = vector.shape_cast %11 : vector<1x32x128xf32> to vector<32x128xf32>
    %c0_14 = arith.constant 0 : index
    %c0_15 = arith.constant 0 : index
    %c0_16 = arith.constant 0 : index
    %13 = vector.load %arg3[%c0_14, %c0_15, %c0_16] : memref<2x32x128xf32, #tpu.memory_space<vmem>>, vector<1x32x128xf32>
    %14 = vector.shape_cast %13 : vector<1x32x128xf32> to vector<32x128xf32>
    %c1_17 = arith.constant 1 : index
    %c0_18 = arith.constant 0 : index
    %c0_19 = arith.constant 0 : index
    %15 = vector.load %arg3[%c1_17, %c0_18, %c0_19] : memref<2x32x128xf32, #tpu.memory_space<vmem>>, vector<1x32x128xf32>
    %16 = vector.shape_cast %15 : vector<1x32x128xf32> to vector<32x128xf32>
    %cst_20 = arith.constant 0.000000e+00 : f32
    %17 = vector.broadcast %cst_20 : f32 to vector<1x128xf32>
    %c1_21 = arith.constant 1 : index
    %c0_22 = arith.constant 0 : index
    %18 = vector.load %arg5[%c1_21, %c0_22] : memref<3x128xf32, #tpu.memory_space<vmem>>, vector<1x128xf32>
    %c2_23 = arith.constant 2 : index
    %c0_24 = arith.constant 0 : index
    %19 = vector.load %arg5[%c2_23, %c0_24] : memref<3x128xf32, #tpu.memory_space<vmem>>, vector<1x128xf32>
    %20 = tpu.concatenate %17, %18, %19 in 0 : vector<1x128xf32>, vector<1x128xf32>, vector<1x128xf32> -> vector<3x128xf32>
    %21 = tpu.iota {dimensions = array<i32: 0>} : vector<3x1xi32>
    %cst_25 = arith.constant 0.000000e+00 : f32
    %22 = vector.broadcast %cst_25 : f32 to vector<3x32xf32>
    %cst_26 = arith.constant 0.000000e+00 : f32
    %23 = vector.broadcast %cst_26 : f32 to vector<3x32xf32>
    %c0_i32 = arith.constant 0 : i32
    %c7_i32 = arith.constant 7 : i32
    %24 = arith.minsi %c0_i32, %c7_i32 : i32
    %25 = arith.index_cast %24 : i32 to index
    %c0_27 = arith.constant 0 : index
    %26 = vector.load %arg13[%25, %c0_27] : memref<8x128xf32, #tpu.memory_space<vmem>>, vector<1x128xf32>
    %27 = vector.extract_strided_slice %22 {offsets = [0, 0], sizes = [1, 32], strides = [1, 1]} : vector<3x32xf32> to vector<1x32xf32>
    %cst_28 = arith.constant dense<0.000000e+00> : vector<1x128xf32>
    %28 = tpu.matmul %27, %8, %cst_28 {dimension_numbers = #tpu.dot_dimension_numbers<[1], [0], [0], [1], [0, 0, 1, 1], [], []>} : vector<1x32xf32>, vector<32x128xf32>, vector<1x128xf32> -> vector<1x128xf32>
    %29 = arith.addf %26, %28 : vector<1x128xf32>
    %30 = vector.extract_strided_slice %22 {offsets = [0, 0], sizes = [1, 32], strides = [1, 1]} : vector<3x32xf32> to vector<1x32xf32>
    %cst_29 = arith.constant dense<0.000000e+00> : vector<1x128xf32>
    %31 = tpu.matmul %30, %14, %cst_29 {dimension_numbers = #tpu.dot_dimension_numbers<[1], [0], [0], [1], [0, 0, 1, 1], [], []>} : vector<1x32xf32>, vector<32x128xf32>, vector<1x128xf32> -> vector<1x128xf32>
    %32 = vector.extract_strided_slice %22 {offsets = [1, 0], sizes = [1, 32], strides = [1, 1]} : vector<3x32xf32> to vector<1x32xf32>
    %cst_30 = arith.constant dense<0.000000e+00> : vector<1x128xf32>
    %33 = tpu.matmul %32, %10, %cst_30 {dimension_numbers = #tpu.dot_dimension_numbers<[1], [0], [0], [1], [0, 0, 1, 1], [], []>} : vector<1x32xf32>, vector<32x128xf32>, vector<1x128xf32> -> vector<1x128xf32>
    %34 = arith.addf %31, %33 : vector<1x128xf32>
    %35 = vector.extract_strided_slice %22 {offsets = [1, 0], sizes = [1, 32], strides = [1, 1]} : vector<3x32xf32> to vector<1x32xf32>
    %cst_31 = arith.constant dense<0.000000e+00> : vector<1x128xf32>
    %36 = tpu.matmul %35, %16, %cst_31 {dimension_numbers = #tpu.dot_dimension_numbers<[1], [0], [0], [1], [0, 0, 1, 1], [], []>} : vector<1x32xf32>, vector<32x128xf32>, vector<1x128xf32> -> vector<1x128xf32>
    %37 = vector.extract_strided_slice %22 {offsets = [2, 0], sizes = [1, 32], strides = [1, 1]} : vector<3x32xf32> to vector<1x32xf32>
    %cst_32 = arith.constant dense<0.000000e+00> : vector<1x128xf32>
    %38 = tpu.matmul %37, %12, %cst_32 {dimension_numbers = #tpu.dot_dimension_numbers<[1], [0], [0], [1], [0, 0, 1, 1], [], []>} : vector<1x32xf32>, vector<32x128xf32>, vector<1x128xf32> -> vector<1x128xf32>
    %39 = arith.addf %36, %38 : vector<1x128xf32>
    %40 = tpu.concatenate %29, %34, %39 in 0 : vector<1x128xf32>, vector<1x128xf32>, vector<1x128xf32> -> vector<3x128xf32>
    %41 = arith.addf %40, %20 : vector<3x128xf32>
    %42 = arith.negf %41 : vector<3x128xf32>
    %43 = math.exp %42 : vector<3x128xf32>
    %cst_33 = arith.constant 1.000000e+00 : f32
    %44 = vector.broadcast %cst_33 : f32 to vector<3x128xf32>
    %45 = arith.addf %44, %43 : vector<3x128xf32>
    %46 = arith.divf %44, %45 : vector<3x128xf32>
    %47 = math.tanh %41 : vector<3x128xf32>
    %48 = vector.extract_strided_slice %46 {offsets = [0, 0], sizes = [3, 32], strides = [1, 1]} : vector<3x128xf32> to vector<3x32xf32>
    %49 = vector.extract_strided_slice %46 {offsets = [0, 32], sizes = [3, 32], strides = [1, 1]} : vector<3x128xf32> to vector<3x32xf32>
    %50 = vector.extract_strided_slice %46 {offsets = [0, 96], sizes = [3, 32], strides = [1, 1]} : vector<3x128xf32> to vector<3x32xf32>
    %51 = vector.extract_strided_slice %47 {offsets = [0, 64], sizes = [3, 32], strides = [1, 1]} : vector<3x128xf32> to vector<3x32xf32>
    %52 = arith.mulf %49, %23 : vector<3x32xf32>
    %53 = arith.mulf %48, %51 : vector<3x32xf32>
    %54 = arith.addf %52, %53 : vector<3x32xf32>
    %55 = math.tanh %54 : vector<3x32xf32>
    %56 = arith.mulf %50, %55 : vector<3x32xf32>
    %57 = vector.broadcast %c0_i32 : i32 to vector<3x1xi32>
    %58 = arith.cmpi sge, %57, %21 : vector<3x1xi32>
    %c8_i32 = arith.constant 8 : i32
    %59 = vector.broadcast %c8_i32 : i32 to vector<3x1xi32>
    %60 = arith.addi %59, %21 : vector<3x1xi32>
    %61 = vector.broadcast %c0_i32 : i32 to vector<3x1xi32>
    %62 = arith.cmpi slt, %61, %60 : vector<3x1xi32>
    %63 = arith.andi %58, %62 : vector<3x1xi1>
    %64 = vector.shape_cast %63 : vector<3x1xi1> to vector<3x1xi1>
    %65 = vector.broadcast %64 : vector<3x1xi1> to vector<3x32xi1>
    %66 = arith.select %65, %54, %23 : vector<3x32xi1>, vector<3x32xf32>
    %67 = vector.shape_cast %63 : vector<3x1xi1> to vector<3x1xi1>
    %68 = vector.broadcast %67 : vector<3x1xi1> to vector<3x32xi1>
    %69 = arith.select %68, %56, %22 : vector<3x32xi1>, vector<3x32xf32>
    %70 = vector.extract_strided_slice %69 {offsets = [2, 0], sizes = [1, 32], strides = [1, 1]} : vector<3x32xf32> to vector<1x32xf32>
    %c2_i32 = arith.constant 2 : i32
    %71 = arith.subi %c0_i32, %c2_i32 : i32
    %c0_i32_34 = arith.constant 0 : i32
    %72 = arith.maxsi %71, %c0_i32_34 : i32
    %73 = arith.index_cast %72 : i32 to index
    %c0_35 = arith.constant 0 : index
    %74 = vector.load %arg14[%73, %c0_35] : memref<8x32xf32, #tpu.memory_space<vmem>>, vector<1x32xf32>
    tpu.vector_store %arg14[%73, %c0_35], %70 {strides = array<i32>} : memref<8x32xf32, #tpu.memory_space<vmem>>, vector<1x32xf32>,
    %c1_i32 = arith.constant 1 : i32
    %c7_i32_36 = arith.constant 7 : i32
    %75 = arith.minsi %c1_i32, %c7_i32_36 : i32
    %76 = arith.index_cast %75 : i32 to index
    %c0_37 = arith.constant 0 : index
    %77 = vector.load %arg13[%76, %c0_37] : memref<8x128xf32, #tpu.memory_space<vmem>>, vector<1x128xf32>
    %78 = vector.extract_strided_slice %69 {offsets = [0, 0], sizes = [1, 32], strides = [1, 1]} : vector<3x32xf32> to vector<1x32xf32>
    %cst_38 = arith.constant dense<0.000000e+00> : vector<1x128xf32>
    %79 = tpu.matmul %78, %8, %cst_38 {dimension_numbers = #tpu.dot_dimension_numbers<[1], [0], [0], [1], [0, 0, 1, 1], [], []>} : vector<1x32xf32>, vector<32x128xf32>, vector<1x128xf32> -> vector<1x128xf32>
    %80 = arith.addf %77, %79 : vector<1x128xf32>
    %81 = vector.extract_strided_slice %69 {offsets = [0, 0], sizes = [1, 32], strides = [1, 1]} : vector<3x32xf32> to vector<1x32xf32>
    %cst_39 = arith.constant dense<0.000000e+00> : vector<1x128xf32>
    %82 = tpu.matmul %81, %14, %cst_39 {dimension_numbers = #tpu.dot_dimension_numbers<[1], [0], [0], [1], [0, 0, 1, 1], [], []>} : vector<1x32xf32>, vector<32x128xf32>, vector<1x128xf32> -> vector<1x128xf32>
    %83 = vector.extract_strided_slice %69 {offsets = [1, 0], sizes = [1, 32], strides = [1, 1]} : vector<3x32xf32> to vector<1x32xf32>
    %cst_40 = arith.constant dense<0.000000e+00> : vector<1x128xf32>
    %84 = tpu.matmul %83, %10, %cst_40 {dimension_numbers = #tpu.dot_dimension_numbers<[1], [0], [0], [1], [0, 0, 1, 1], [], []>} : vector<1x32xf32>, vector<32x128xf32>, vector<1x128xf32> -> vector<1x128xf32>
    %85 = arith.addf %82, %84 : vector<1x128xf32>
    %86 = vector.extract_strided_slice %69 {offsets = [1, 0], sizes = [1, 32], strides = [1, 1]} : vector<3x32xf32> to vector<1x32xf32>
    %cst_41 = arith.constant dense<0.000000e+00> : vector<1x128xf32>
    %87 = tpu.matmul %86, %16, %cst_41 {dimension_numbers = #tpu.dot_dimension_numbers<[1], [0], [0], [1], [0, 0, 1, 1], [], []>} : vector<1x32xf32>, vector<32x128xf32>, vector<1x128xf32> -> vector<1x128xf32>
    %88 = vector.extract_strided_slice %69 {offsets = [2, 0], sizes = [1, 32], strides = [1, 1]} : vector<3x32xf32> to vector<1x32xf32>
    %cst_42 = arith.constant dense<0.000000e+00> : vector<1x128xf32>
    %89 = tpu.matmul %88, %12, %cst_42 {dimension_numbers = #tpu.dot_dimension_numbers<[1], [0], [0], [1], [0, 0, 1, 1], [], []>} : vector<1x32xf32>, vector<32x128xf32>, vector<1x128xf32> -> vector<1x128xf32>
    %90 = arith.addf %87, %89 : vector<1x128xf32>
    %91 = tpu.concatenate %80, %85, %90 in 0 : vector<1x128xf32>, vector<1x128xf32>, vector<1x128xf32> -> vector<3x128xf32>
    %92 = arith.addf %91, %20 : vector<3x128xf32>
    %93 = arith.negf %92 : vector<3x128xf32>
    %94 = math.exp %93 : vector<3x128xf32>
    %cst_43 = arith.constant 1.000000e+00 : f32
    %95 = vector.broadcast %cst_43 : f32 to vector<3x128xf32>
    %96 = arith.addf %95, %94 : vector<3x128xf32>
    %97 = arith.divf %95, %96 : vector<3x128xf32>
    %98 = math.tanh %92 : vector<3x128xf32>
    %99 = vector.extract_strided_slice %97 {offsets = [0, 0], sizes = [3, 32], strides = [1, 1]} : vector<3x128xf32> to vector<3x32xf32>
    %100 = vector.extract_strided_slice %97 {offsets = [0, 32], sizes = [3, 32], strides = [1, 1]} : vector<3x128xf32> to vector<3x32xf32>
    %101 = vector.extract_strided_slice %97 {offsets = [0, 96], sizes = [3, 32], strides = [1, 1]} : vector<3x128xf32> to vector<3x32xf32>
    %102 = vector.extract_strided_slice %98 {offsets = [0, 64], sizes = [3, 32], strides = [1, 1]} : vector<3x128xf32> to vector<3x32xf32>
    %103 = arith.mulf %100, %66 : vector<3x32xf32>
    %104 = arith.mulf %99, %102 : vector<3x32xf32>
    %105 = arith.addf %103, %104 : vector<3x32xf32>
    %106 = math.tanh %105 : vector<3x32xf32>
    %107 = arith.mulf %101, %106 : vector<3x32xf32>
    %108 = vector.broadcast %c1_i32 : i32 to vector<3x1xi32>
    %109 = arith.cmpi sge, %108, %21 : vector<3x1xi32>
    %c8_i32_44 = arith.constant 8 : i32
    %110 = vector.broadcast %c8_i32_44 : i32 to vector<3x1xi32>
    %111 = arith.addi %110, %21 : vector<3x1xi32>
    %112 = vector.broadcast %c1_i32 : i32 to vector<3x1xi32>
    %113 = arith.cmpi slt, %112, %111 : vector<3x1xi32>
    %114 = arith.andi %109, %113 : vector<3x1xi1>
    %115 = vector.shape_cast %114 : vector<3x1xi1> to vector<3x1xi1>
    %116 = vector.broadcast %115 : vector<3x1xi1> to vector<3x32xi1>
    %117 = arith.select %116, %105, %66 : vector<3x32xi1>, vector<3x32xf32>
    %118 = vector.shape_cast %114 : vector<3x1xi1> to vector<3x1xi1>
    %119 = vector.broadcast %118 : vector<3x1xi1> to vector<3x32xi1>
    %120 = arith.select %119, %107, %69 : vector<3x32xi1>, vector<3x32xf32>
    %121 = vector.extract_strided_slice %120 {offsets = [2, 0], sizes = [1, 32], strides = [1, 1]} : vector<3x32xf32> to vector<1x32xf32>
    %c2_i32_45 = arith.constant 2 : i32
    %122 = arith.subi %c1_i32, %c2_i32_45 : i32
    %c0_i32_46 = arith.constant 0 : i32
    %123 = arith.maxsi %122, %c0_i32_46 : i32
    %124 = arith.index_cast %123 : i32 to index
    %c0_47 = arith.constant 0 : index
    %125 = vector.load %arg14[%124, %c0_47] : memref<8x32xf32, #tpu.memory_space<vmem>>, vector<1x32xf32>
    tpu.vector_store %arg14[%124, %c0_47], %121 {strides = array<i32>} : memref<8x32xf32, #tpu.memory_space<vmem>>, vector<1x32xf32>,
    %c2_i32_48 = arith.constant 2 : i32
    %c7_i32_49 = arith.constant 7 : i32
    %126 = arith.minsi %c2_i32_48, %c7_i32_49 : i32
    %127 = arith.index_cast %126 : i32 to index
    %c0_50 = arith.constant 0 : index
    %128 = vector.load %arg13[%127, %c0_50] : memref<8x128xf32, #tpu.memory_space<vmem>>, vector<1x128xf32>
    %129 = vector.extract_strided_slice %120 {offsets = [0, 0], sizes = [1, 32], strides = [1, 1]} : vector<3x32xf32> to vector<1x32xf32>
    %cst_51 = arith.constant dense<0.000000e+00> : vector<1x128xf32>
    %130 = tpu.matmul %129, %8, %cst_51 {dimension_numbers = #tpu.dot_dimension_numbers<[1], [0], [0], [1], [0, 0, 1, 1], [], []>} : vector<1x32xf32>, vector<32x128xf32>, vector<1x128xf32> -> vector<1x128xf32>
    %131 = arith.addf %128, %130 : vector<1x128xf32>
    %132 = vector.extract_strided_slice %120 {offsets = [0, 0], sizes = [1, 32], strides = [1, 1]} : vector<3x32xf32> to vector<1x32xf32>
    %cst_52 = arith.constant dense<0.000000e+00> : vector<1x128xf32>
    %133 = tpu.matmul %132, %14, %cst_52 {dimension_numbers = #tpu.dot_dimension_numbers<[1], [0], [0], [1], [0, 0, 1, 1], [], []>} : vector<1x32xf32>, vector<32x128xf32>, vector<1x128xf32> -> vector<1x128xf32>
    %134 = vector.extract_strided_slice %120 {offsets = [1, 0], sizes = [1, 32], strides = [1, 1]} : vector<3x32xf32> to vector<1x32xf32>
    %cst_53 = arith.constant dense<0.000000e+00> : vector<1x128xf32>
    %135 = tpu.matmul %134, %10, %cst_53 {dimension_numbers = #tpu.dot_dimension_numbers<[1], [0], [0], [1], [0, 0, 1, 1], [], []>} : vector<1x32xf32>, vector<32x128xf32>, vector<1x128xf32> -> vector<1x128xf32>
    %136 = arith.addf %133, %135 : vector<1x128xf32>
    %137 = vector.extract_strided_slice %120 {offsets = [1, 0], sizes = [1, 32], strides = [1, 1]} : vector<3x32xf32> to vector<1x32xf32>
    %cst_54 = arith.constant dense<0.000000e+00> : vector<1x128xf32>
    %138 = tpu.matmul %137, %16, %cst_54 {dimension_numbers = #tpu.dot_dimension_numbers<[1], [0], [0], [1], [0, 0, 1, 1], [], []>} : vector<1x32xf32>, vector<32x128xf32>, vector<1x128xf32> -> vector<1x128xf32>
    %139 = vector.extract_strided_slice %120 {offsets = [2, 0], sizes = [1, 32], strides = [1, 1]} : vector<3x32xf32> to vector<1x32xf32>
    %cst_55 = arith.constant dense<0.000000e+00> : vector<1x128xf32>
    %140 = tpu.matmul %139, %12, %cst_55 {dimension_numbers = #tpu.dot_dimension_numbers<[1], [0], [0], [1], [0, 0, 1, 1], [], []>} : vector<1x32xf32>, vector<32x128xf32>, vector<1x128xf32> -> vector<1x128xf32>
    %141 = arith.addf %138, %140 : vector<1x128xf32>
    %142 = tpu.concatenate %131, %136, %141 in 0 : vector<1x128xf32>, vector<1x128xf32>, vector<1x128xf32> -> vector<3x128xf32>
    %143 = arith.addf %142, %20 : vector<3x128xf32>
    %144 = arith.negf %143 : vector<3x128xf32>
    %145 = math.exp %144 : vector<3x128xf32>
    %cst_56 = arith.constant 1.000000e+00 : f32
    %146 = vector.broadcast %cst_56 : f32 to vector<3x128xf32>
    %147 = arith.addf %146, %145 : vector<3x128xf32>
    %148 = arith.divf %146, %147 : vector<3x128xf32>
    %149 = math.tanh %143 : vector<3x128xf32>
    %150 = vector.extract_strided_slice %148 {offsets = [0, 0], sizes = [3, 32], strides = [1, 1]} : vector<3x128xf32> to vector<3x32xf32>
    %151 = vector.extract_strided_slice %148 {offsets = [0, 32], sizes = [3, 32], strides = [1, 1]} : vector<3x128xf32> to vector<3x32xf32>
    %152 = vector.extract_strided_slice %148 {offsets = [0, 96], sizes = [3, 32], strides = [1, 1]} : vector<3x128xf32> to vector<3x32xf32>
    %153 = vector.extract_strided_slice %149 {offsets = [0, 64], sizes = [3, 32], strides = [1, 1]} : vector<3x128xf32> to vector<3x32xf32>
    %154 = arith.mulf %151, %117 : vector<3x32xf32>
    %155 = arith.mulf %150, %153 : vector<3x32xf32>
    %156 = arith.addf %154, %155 : vector<3x32xf32>
    %157 = math.tanh %156 : vector<3x32xf32>
    %158 = arith.mulf %152, %157 : vector<3x32xf32>
    %159 = vector.broadcast %c2_i32_48 : i32 to vector<3x1xi32>
    %160 = arith.cmpi sge, %159, %21 : vector<3x1xi32>
    %c8_i32_57 = arith.constant 8 : i32
    %161 = vector.broadcast %c8_i32_57 : i32 to vector<3x1xi32>
    %162 = arith.addi %161, %21 : vector<3x1xi32>
    %163 = vector.broadcast %c2_i32_48 : i32 to vector<3x1xi32>
    %164 = arith.cmpi slt, %163, %162 : vector<3x1xi32>
    %165 = arith.andi %160, %164 : vector<3x1xi1>
    %166 = vector.shape_cast %165 : vector<3x1xi1> to vector<3x1xi1>
    %167 = vector.broadcast %166 : vector<3x1xi1> to vector<3x32xi1>
    %168 = arith.select %167, %156, %117 : vector<3x32xi1>, vector<3x32xf32>
    %169 = vector.shape_cast %165 : vector<3x1xi1> to vector<3x1xi1>
    %170 = vector.broadcast %169 : vector<3x1xi1> to vector<3x32xi1>
    %171 = arith.select %170, %158, %120 : vector<3x32xi1>, vector<3x32xf32>
    %172 = vector.extract_strided_slice %171 {offsets = [2, 0], sizes = [1, 32], strides = [1, 1]} : vector<3x32xf32> to vector<1x32xf32>
    %c2_i32_58 = arith.constant 2 : i32
    %173 = arith.subi %c2_i32_48, %c2_i32_58 : i32
    %c0_i32_59 = arith.constant 0 : i32
    %174 = arith.maxsi %173, %c0_i32_59 : i32
    %175 = arith.index_cast %174 : i32 to index
    %c0_60 = arith.constant 0 : index
    %176 = vector.load %arg14[%175, %c0_60] : memref<8x32xf32, #tpu.memory_space<vmem>>, vector<1x32xf32>
    tpu.vector_store %arg14[%175, %c0_60], %172 {strides = array<i32>} : memref<8x32xf32, #tpu.memory_space<vmem>>, vector<1x32xf32>,
    %c3_i32 = arith.constant 3 : i32
    %c7_i32_61 = arith.constant 7 : i32
    %177 = arith.minsi %c3_i32, %c7_i32_61 : i32
    %178 = arith.index_cast %177 : i32 to index
    %c0_62 = arith.constant 0 : index
    %179 = vector.load %arg13[%178, %c0_62] : memref<8x128xf32, #tpu.memory_space<vmem>>, vector<1x128xf32>
    %180 = vector.extract_strided_slice %171 {offsets = [0, 0], sizes = [1, 32], strides = [1, 1]} : vector<3x32xf32> to vector<1x32xf32>
    %cst_63 = arith.constant dense<0.000000e+00> : vector<1x128xf32>
    %181 = tpu.matmul %180, %8, %cst_63 {dimension_numbers = #tpu.dot_dimension_numbers<[1], [0], [0], [1], [0, 0, 1, 1], [], []>} : vector<1x32xf32>, vector<32x128xf32>, vector<1x128xf32> -> vector<1x128xf32>
    %182 = arith.addf %179, %181 : vector<1x128xf32>
    %183 = vector.extract_strided_slice %171 {offsets = [0, 0], sizes = [1, 32], strides = [1, 1]} : vector<3x32xf32> to vector<1x32xf32>
    %cst_64 = arith.constant dense<0.000000e+00> : vector<1x128xf32>
    %184 = tpu.matmul %183, %14, %cst_64 {dimension_numbers = #tpu.dot_dimension_numbers<[1], [0], [0], [1], [0, 0, 1, 1], [], []>} : vector<1x32xf32>, vector<32x128xf32>, vector<1x128xf32> -> vector<1x128xf32>
    %185 = vector.extract_strided_slice %171 {offsets = [1, 0], sizes = [1, 32], strides = [1, 1]} : vector<3x32xf32> to vector<1x32xf32>
    %cst_65 = arith.constant dense<0.000000e+00> : vector<1x128xf32>
    %186 = tpu.matmul %185, %10, %cst_65 {dimension_numbers = #tpu.dot_dimension_numbers<[1], [0], [0], [1], [0, 0, 1, 1], [], []>} : vector<1x32xf32>, vector<32x128xf32>, vector<1x128xf32> -> vector<1x128xf32>
    %187 = arith.addf %184, %186 : vector<1x128xf32>
    %188 = vector.extract_strided_slice %171 {offsets = [1, 0], sizes = [1, 32], strides = [1, 1]} : vector<3x32xf32> to vector<1x32xf32>
    %cst_66 = arith.constant dense<0.000000e+00> : vector<1x128xf32>
    %189 = tpu.matmul %188, %16, %cst_66 {dimension_numbers = #tpu.dot_dimension_numbers<[1], [0], [0], [1], [0, 0, 1, 1], [], []>} : vector<1x32xf32>, vector<32x128xf32>, vector<1x128xf32> -> vector<1x128xf32>
    %190 = vector.extract_strided_slice %171 {offsets = [2, 0], sizes = [1, 32], strides = [1, 1]} : vector<3x32xf32> to vector<1x32xf32>
    %cst_67 = arith.constant dense<0.000000e+00> : vector<1x128xf32>
    %191 = tpu.matmul %190, %12, %cst_67 {dimension_numbers = #tpu.dot_dimension_numbers<[1], [0], [0], [1], [0, 0, 1, 1], [], []>} : vector<1x32xf32>, vector<32x128xf32>, vector<1x128xf32> -> vector<1x128xf32>
    %192 = arith.addf %189, %191 : vector<1x128xf32>
    %193 = tpu.concatenate %182, %187, %192 in 0 : vector<1x128xf32>, vector<1x128xf32>, vector<1x128xf32> -> vector<3x128xf32>
    %194 = arith.addf %193, %20 : vector<3x128xf32>
    %195 = arith.negf %194 : vector<3x128xf32>
    %196 = math.exp %195 : vector<3x128xf32>
    %cst_68 = arith.constant 1.000000e+00 : f32
    %197 = vector.broadcast %cst_68 : f32 to vector<3x128xf32>
    %198 = arith.addf %197, %196 : vector<3x128xf32>
    %199 = arith.divf %197, %198 : vector<3x128xf32>
    %200 = math.tanh %194 : vector<3x128xf32>
    %201 = vector.extract_strided_slice %199 {offsets = [0, 0], sizes = [3, 32], strides = [1, 1]} : vector<3x128xf32> to vector<3x32xf32>
    %202 = vector.extract_strided_slice %199 {offsets = [0, 32], sizes = [3, 32], strides = [1, 1]} : vector<3x128xf32> to vector<3x32xf32>
    %203 = vector.extract_strided_slice %199 {offsets = [0, 96], sizes = [3, 32], strides = [1, 1]} : vector<3x128xf32> to vector<3x32xf32>
    %204 = vector.extract_strided_slice %200 {offsets = [0, 64], sizes = [3, 32], strides = [1, 1]} : vector<3x128xf32> to vector<3x32xf32>
    %205 = arith.mulf %202, %168 : vector<3x32xf32>
    %206 = arith.mulf %201, %204 : vector<3x32xf32>
    %207 = arith.addf %205, %206 : vector<3x32xf32>
    %208 = math.tanh %207 : vector<3x32xf32>
    %209 = arith.mulf %203, %208 : vector<3x32xf32>
    %210 = vector.broadcast %c3_i32 : i32 to vector<3x1xi32>
    %211 = arith.cmpi sge, %210, %21 : vector<3x1xi32>
    %c8_i32_69 = arith.constant 8 : i32
    %212 = vector.broadcast %c8_i32_69 : i32 to vector<3x1xi32>
    %213 = arith.addi %212, %21 : vector<3x1xi32>
    %214 = vector.broadcast %c3_i32 : i32 to vector<3x1xi32>
    %215 = arith.cmpi slt, %214, %213 : vector<3x1xi32>
    %216 = arith.andi %211, %215 : vector<3x1xi1>
    %217 = vector.shape_cast %216 : vector<3x1xi1> to vector<3x1xi1>
    %218 = vector.broadcast %217 : vector<3x1xi1> to vector<3x32xi1>
    %219 = arith.select %218, %207, %168 : vector<3x32xi1>, vector<3x32xf32>
    %220 = vector.shape_cast %216 : vector<3x1xi1> to vector<3x1xi1>
    %221 = vector.broadcast %220 : vector<3x1xi1> to vector<3x32xi1>
    %222 = arith.select %221, %209, %171 : vector<3x32xi1>, vector<3x32xf32>
    %223 = vector.extract_strided_slice %222 {offsets = [2, 0], sizes = [1, 32], strides = [1, 1]} : vector<3x32xf32> to vector<1x32xf32>
    %c2_i32_70 = arith.constant 2 : i32
    %224 = arith.subi %c3_i32, %c2_i32_70 : i32
    %c0_i32_71 = arith.constant 0 : i32
    %225 = arith.maxsi %224, %c0_i32_71 : i32
    %226 = arith.index_cast %225 : i32 to index
    %c0_72 = arith.constant 0 : index
    %227 = vector.load %arg14[%226, %c0_72] : memref<8x32xf32, #tpu.memory_space<vmem>>, vector<1x32xf32>
    tpu.vector_store %arg14[%226, %c0_72], %223 {strides = array<i32>} : memref<8x32xf32, #tpu.memory_space<vmem>>, vector<1x32xf32>,
    %c4_i32 = arith.constant 4 : i32
    %c7_i32_73 = arith.constant 7 : i32
    %228 = arith.minsi %c4_i32, %c7_i32_73 : i32
    %229 = arith.index_cast %228 : i32 to index
    %c0_74 = arith.constant 0 : index
    %230 = vector.load %arg13[%229, %c0_74] : memref<8x128xf32, #tpu.memory_space<vmem>>, vector<1x128xf32>
    %231 = vector.extract_strided_slice %222 {offsets = [0, 0], sizes = [1, 32], strides = [1, 1]} : vector<3x32xf32> to vector<1x32xf32>
    %cst_75 = arith.constant dense<0.000000e+00> : vector<1x128xf32>
    %232 = tpu.matmul %231, %8, %cst_75 {dimension_numbers = #tpu.dot_dimension_numbers<[1], [0], [0], [1], [0, 0, 1, 1], [], []>} : vector<1x32xf32>, vector<32x128xf32>, vector<1x128xf32> -> vector<1x128xf32>
    %233 = arith.addf %230, %232 : vector<1x128xf32>
    %234 = vector.extract_strided_slice %222 {offsets = [0, 0], sizes = [1, 32], strides = [1, 1]} : vector<3x32xf32> to vector<1x32xf32>
    %cst_76 = arith.constant dense<0.000000e+00> : vector<1x128xf32>
    %235 = tpu.matmul %234, %14, %cst_76 {dimension_numbers = #tpu.dot_dimension_numbers<[1], [0], [0], [1], [0, 0, 1, 1], [], []>} : vector<1x32xf32>, vector<32x128xf32>, vector<1x128xf32> -> vector<1x128xf32>
    %236 = vector.extract_strided_slice %222 {offsets = [1, 0], sizes = [1, 32], strides = [1, 1]} : vector<3x32xf32> to vector<1x32xf32>
    %cst_77 = arith.constant dense<0.000000e+00> : vector<1x128xf32>
    %237 = tpu.matmul %236, %10, %cst_77 {dimension_numbers = #tpu.dot_dimension_numbers<[1], [0], [0], [1], [0, 0, 1, 1], [], []>} : vector<1x32xf32>, vector<32x128xf32>, vector<1x128xf32> -> vector<1x128xf32>
    %238 = arith.addf %235, %237 : vector<1x128xf32>
    %239 = vector.extract_strided_slice %222 {offsets = [1, 0], sizes = [1, 32], strides = [1, 1]} : vector<3x32xf32> to vector<1x32xf32>
    %cst_78 = arith.constant dense<0.000000e+00> : vector<1x128xf32>
    %240 = tpu.matmul %239, %16, %cst_78 {dimension_numbers = #tpu.dot_dimension_numbers<[1], [0], [0], [1], [0, 0, 1, 1], [], []>} : vector<1x32xf32>, vector<32x128xf32>, vector<1x128xf32> -> vector<1x128xf32>
    %241 = vector.extract_strided_slice %222 {offsets = [2, 0], sizes = [1, 32], strides = [1, 1]} : vector<3x32xf32> to vector<1x32xf32>
    %cst_79 = arith.constant dense<0.000000e+00> : vector<1x128xf32>
    %242 = tpu.matmul %241, %12, %cst_79 {dimension_numbers = #tpu.dot_dimension_numbers<[1], [0], [0], [1], [0, 0, 1, 1], [], []>} : vector<1x32xf32>, vector<32x128xf32>, vector<1x128xf32> -> vector<1x128xf32>
    %243 = arith.addf %240, %242 : vector<1x128xf32>
    %244 = tpu.concatenate %233, %238, %243 in 0 : vector<1x128xf32>, vector<1x128xf32>, vector<1x128xf32> -> vector<3x128xf32>
    %245 = arith.addf %244, %20 : vector<3x128xf32>
    %246 = arith.negf %245 : vector<3x128xf32>
    %247 = math.exp %246 : vector<3x128xf32>
    %cst_80 = arith.constant 1.000000e+00 : f32
    %248 = vector.broadcast %cst_80 : f32 to vector<3x128xf32>
    %249 = arith.addf %248, %247 : vector<3x128xf32>
    %250 = arith.divf %248, %249 : vector<3x128xf32>
    %251 = math.tanh %245 : vector<3x128xf32>
    %252 = vector.extract_strided_slice %250 {offsets = [0, 0], sizes = [3, 32], strides = [1, 1]} : vector<3x128xf32> to vector<3x32xf32>
    %253 = vector.extract_strided_slice %250 {offsets = [0, 32], sizes = [3, 32], strides = [1, 1]} : vector<3x128xf32> to vector<3x32xf32>
    %254 = vector.extract_strided_slice %250 {offsets = [0, 96], sizes = [3, 32], strides = [1, 1]} : vector<3x128xf32> to vector<3x32xf32>
    %255 = vector.extract_strided_slice %251 {offsets = [0, 64], sizes = [3, 32], strides = [1, 1]} : vector<3x128xf32> to vector<3x32xf32>
    %256 = arith.mulf %253, %219 : vector<3x32xf32>
    %257 = arith.mulf %252, %255 : vector<3x32xf32>
    %258 = arith.addf %256, %257 : vector<3x32xf32>
    %259 = math.tanh %258 : vector<3x32xf32>
    %260 = arith.mulf %254, %259 : vector<3x32xf32>
    %261 = vector.broadcast %c4_i32 : i32 to vector<3x1xi32>
    %262 = arith.cmpi sge, %261, %21 : vector<3x1xi32>
    %c8_i32_81 = arith.constant 8 : i32
    %263 = vector.broadcast %c8_i32_81 : i32 to vector<3x1xi32>
    %264 = arith.addi %263, %21 : vector<3x1xi32>
    %265 = vector.broadcast %c4_i32 : i32 to vector<3x1xi32>
    %266 = arith.cmpi slt, %265, %264 : vector<3x1xi32>
    %267 = arith.andi %262, %266 : vector<3x1xi1>
    %268 = vector.shape_cast %267 : vector<3x1xi1> to vector<3x1xi1>
    %269 = vector.broadcast %268 : vector<3x1xi1> to vector<3x32xi1>
    %270 = arith.select %269, %258, %219 : vector<3x32xi1>, vector<3x32xf32>
    %271 = vector.shape_cast %267 : vector<3x1xi1> to vector<3x1xi1>
    %272 = vector.broadcast %271 : vector<3x1xi1> to vector<3x32xi1>
    %273 = arith.select %272, %260, %222 : vector<3x32xi1>, vector<3x32xf32>
    %274 = vector.extract_strided_slice %273 {offsets = [2, 0], sizes = [1, 32], strides = [1, 1]} : vector<3x32xf32> to vector<1x32xf32>
    %c2_i32_82 = arith.constant 2 : i32
    %275 = arith.subi %c4_i32, %c2_i32_82 : i32
    %c0_i32_83 = arith.constant 0 : i32
    %276 = arith.maxsi %275, %c0_i32_83 : i32
    %277 = arith.index_cast %276 : i32 to index
    %c0_84 = arith.constant 0 : index
    %278 = vector.load %arg14[%277, %c0_84] : memref<8x32xf32, #tpu.memory_space<vmem>>, vector<1x32xf32>
    tpu.vector_store %arg14[%277, %c0_84], %274 {strides = array<i32>} : memref<8x32xf32, #tpu.memory_space<vmem>>, vector<1x32xf32>,
    %c5_i32 = arith.constant 5 : i32
    %c7_i32_85 = arith.constant 7 : i32
    %279 = arith.minsi %c5_i32, %c7_i32_85 : i32
    %280 = arith.index_cast %279 : i32 to index
    %c0_86 = arith.constant 0 : index
    %281 = vector.load %arg13[%280, %c0_86] : memref<8x128xf32, #tpu.memory_space<vmem>>, vector<1x128xf32>
    %282 = vector.extract_strided_slice %273 {offsets = [0, 0], sizes = [1, 32], strides = [1, 1]} : vector<3x32xf32> to vector<1x32xf32>
    %cst_87 = arith.constant dense<0.000000e+00> : vector<1x128xf32>
    %283 = tpu.matmul %282, %8, %cst_87 {dimension_numbers = #tpu.dot_dimension_numbers<[1], [0], [0], [1], [0, 0, 1, 1], [], []>} : vector<1x32xf32>, vector<32x128xf32>, vector<1x128xf32> -> vector<1x128xf32>
    %284 = arith.addf %281, %283 : vector<1x128xf32>
    %285 = vector.extract_strided_slice %273 {offsets = [0, 0], sizes = [1, 32], strides = [1, 1]} : vector<3x32xf32> to vector<1x32xf32>
    %cst_88 = arith.constant dense<0.000000e+00> : vector<1x128xf32>
    %286 = tpu.matmul %285, %14, %cst_88 {dimension_numbers = #tpu.dot_dimension_numbers<[1], [0], [0], [1], [0, 0, 1, 1], [], []>} : vector<1x32xf32>, vector<32x128xf32>, vector<1x128xf32> -> vector<1x128xf32>
    %287 = vector.extract_strided_slice %273 {offsets = [1, 0], sizes = [1, 32], strides = [1, 1]} : vector<3x32xf32> to vector<1x32xf32>
    %cst_89 = arith.constant dense<0.000000e+00> : vector<1x128xf32>
    %288 = tpu.matmul %287, %10, %cst_89 {dimension_numbers = #tpu.dot_dimension_numbers<[1], [0], [0], [1], [0, 0, 1, 1], [], []>} : vector<1x32xf32>, vector<32x128xf32>, vector<1x128xf32> -> vector<1x128xf32>
    %289 = arith.addf %286, %288 : vector<1x128xf32>
    %290 = vector.extract_strided_slice %273 {offsets = [1, 0], sizes = [1, 32], strides = [1, 1]} : vector<3x32xf32> to vector<1x32xf32>
    %cst_90 = arith.constant dense<0.000000e+00> : vector<1x128xf32>
    %291 = tpu.matmul %290, %16, %cst_90 {dimension_numbers = #tpu.dot_dimension_numbers<[1], [0], [0], [1], [0, 0, 1, 1], [], []>} : vector<1x32xf32>, vector<32x128xf32>, vector<1x128xf32> -> vector<1x128xf32>
    %292 = vector.extract_strided_slice %273 {offsets = [2, 0], sizes = [1, 32], strides = [1, 1]} : vector<3x32xf32> to vector<1x32xf32>
    %cst_91 = arith.constant dense<0.000000e+00> : vector<1x128xf32>
    %293 = tpu.matmul %292, %12, %cst_91 {dimension_numbers = #tpu.dot_dimension_numbers<[1], [0], [0], [1], [0, 0, 1, 1], [], []>} : vector<1x32xf32>, vector<32x128xf32>, vector<1x128xf32> -> vector<1x128xf32>
    %294 = arith.addf %291, %293 : vector<1x128xf32>
    %295 = tpu.concatenate %284, %289, %294 in 0 : vector<1x128xf32>, vector<1x128xf32>, vector<1x128xf32> -> vector<3x128xf32>
    %296 = arith.addf %295, %20 : vector<3x128xf32>
    %297 = arith.negf %296 : vector<3x128xf32>
    %298 = math.exp %297 : vector<3x128xf32>
    %cst_92 = arith.constant 1.000000e+00 : f32
    %299 = vector.broadcast %cst_92 : f32 to vector<3x128xf32>
    %300 = arith.addf %299, %298 : vector<3x128xf32>
    %301 = arith.divf %299, %300 : vector<3x128xf32>
    %302 = math.tanh %296 : vector<3x128xf32>
    %303 = vector.extract_strided_slice %301 {offsets = [0, 0], sizes = [3, 32], strides = [1, 1]} : vector<3x128xf32> to vector<3x32xf32>
    %304 = vector.extract_strided_slice %301 {offsets = [0, 32], sizes = [3, 32], strides = [1, 1]} : vector<3x128xf32> to vector<3x32xf32>
    %305 = vector.extract_strided_slice %301 {offsets = [0, 96], sizes = [3, 32], strides = [1, 1]} : vector<3x128xf32> to vector<3x32xf32>
    %306 = vector.extract_strided_slice %302 {offsets = [0, 64], sizes = [3, 32], strides = [1, 1]} : vector<3x128xf32> to vector<3x32xf32>
    %307 = arith.mulf %304, %270 : vector<3x32xf32>
    %308 = arith.mulf %303, %306 : vector<3x32xf32>
    %309 = arith.addf %307, %308 : vector<3x32xf32>
    %310 = math.tanh %309 : vector<3x32xf32>
    %311 = arith.mulf %305, %310 : vector<3x32xf32>
    %312 = vector.broadcast %c5_i32 : i32 to vector<3x1xi32>
    %313 = arith.cmpi sge, %312, %21 : vector<3x1xi32>
    %c8_i32_93 = arith.constant 8 : i32
    %314 = vector.broadcast %c8_i32_93 : i32 to vector<3x1xi32>
    %315 = arith.addi %314, %21 : vector<3x1xi32>
    %316 = vector.broadcast %c5_i32 : i32 to vector<3x1xi32>
    %317 = arith.cmpi slt, %316, %315 : vector<3x1xi32>
    %318 = arith.andi %313, %317 : vector<3x1xi1>
    %319 = vector.shape_cast %318 : vector<3x1xi1> to vector<3x1xi1>
    %320 = vector.broadcast %319 : vector<3x1xi1> to vector<3x32xi1>
    %321 = arith.select %320, %309, %270 : vector<3x32xi1>, vector<3x32xf32>
    %322 = vector.shape_cast %318 : vector<3x1xi1> to vector<3x1xi1>
    %323 = vector.broadcast %322 : vector<3x1xi1> to vector<3x32xi1>
    %324 = arith.select %323, %311, %273 : vector<3x32xi1>, vector<3x32xf32>
    %325 = vector.extract_strided_slice %324 {offsets = [2, 0], sizes = [1, 32], strides = [1, 1]} : vector<3x32xf32> to vector<1x32xf32>
    %c2_i32_94 = arith.constant 2 : i32
    %326 = arith.subi %c5_i32, %c2_i32_94 : i32
    %c0_i32_95 = arith.constant 0 : i32
    %327 = arith.maxsi %326, %c0_i32_95 : i32
    %328 = arith.index_cast %327 : i32 to index
    %c0_96 = arith.constant 0 : index
    %329 = vector.load %arg14[%328, %c0_96] : memref<8x32xf32, #tpu.memory_space<vmem>>, vector<1x32xf32>
    tpu.vector_store %arg14[%328, %c0_96], %325 {strides = array<i32>} : memref<8x32xf32, #tpu.memory_space<vmem>>, vector<1x32xf32>,
    %c6_i32 = arith.constant 6 : i32
    %c7_i32_97 = arith.constant 7 : i32
    %330 = arith.minsi %c6_i32, %c7_i32_97 : i32
    %331 = arith.index_cast %330 : i32 to index
    %c0_98 = arith.constant 0 : index
    %332 = vector.load %arg13[%331, %c0_98] : memref<8x128xf32, #tpu.memory_space<vmem>>, vector<1x128xf32>
    %333 = vector.extract_strided_slice %324 {offsets = [0, 0], sizes = [1, 32], strides = [1, 1]} : vector<3x32xf32> to vector<1x32xf32>
    %cst_99 = arith.constant dense<0.000000e+00> : vector<1x128xf32>
    %334 = tpu.matmul %333, %8, %cst_99 {dimension_numbers = #tpu.dot_dimension_numbers<[1], [0], [0], [1], [0, 0, 1, 1], [], []>} : vector<1x32xf32>, vector<32x128xf32>, vector<1x128xf32> -> vector<1x128xf32>
    %335 = arith.addf %332, %334 : vector<1x128xf32>
    %336 = vector.extract_strided_slice %324 {offsets = [0, 0], sizes = [1, 32], strides = [1, 1]} : vector<3x32xf32> to vector<1x32xf32>
    %cst_100 = arith.constant dense<0.000000e+00> : vector<1x128xf32>
    %337 = tpu.matmul %336, %14, %cst_100 {dimension_numbers = #tpu.dot_dimension_numbers<[1], [0], [0], [1], [0, 0, 1, 1], [], []>} : vector<1x32xf32>, vector<32x128xf32>, vector<1x128xf32> -> vector<1x128xf32>
    %338 = vector.extract_strided_slice %324 {offsets = [1, 0], sizes = [1, 32], strides = [1, 1]} : vector<3x32xf32> to vector<1x32xf32>
    %cst_101 = arith.constant dense<0.000000e+00> : vector<1x128xf32>
    %339 = tpu.matmul %338, %10, %cst_101 {dimension_numbers = #tpu.dot_dimension_numbers<[1], [0], [0], [1], [0, 0, 1, 1], [], []>} : vector<1x32xf32>, vector<32x128xf32>, vector<1x128xf32> -> vector<1x128xf32>
    %340 = arith.addf %337, %339 : vector<1x128xf32>
    %341 = vector.extract_strided_slice %324 {offsets = [1, 0], sizes = [1, 32], strides = [1, 1]} : vector<3x32xf32> to vector<1x32xf32>
    %cst_102 = arith.constant dense<0.000000e+00> : vector<1x128xf32>
    %342 = tpu.matmul %341, %16, %cst_102 {dimension_numbers = #tpu.dot_dimension_numbers<[1], [0], [0], [1], [0, 0, 1, 1], [], []>} : vector<1x32xf32>, vector<32x128xf32>, vector<1x128xf32> -> vector<1x128xf32>
    %343 = vector.extract_strided_slice %324 {offsets = [2, 0], sizes = [1, 32], strides = [1, 1]} : vector<3x32xf32> to vector<1x32xf32>
    %cst_103 = arith.constant dense<0.000000e+00> : vector<1x128xf32>
    %344 = tpu.matmul %343, %12, %cst_103 {dimension_numbers = #tpu.dot_dimension_numbers<[1], [0], [0], [1], [0, 0, 1, 1], [], []>} : vector<1x32xf32>, vector<32x128xf32>, vector<1x128xf32> -> vector<1x128xf32>
    %345 = arith.addf %342, %344 : vector<1x128xf32>
    %346 = tpu.concatenate %335, %340, %345 in 0 : vector<1x128xf32>, vector<1x128xf32>, vector<1x128xf32> -> vector<3x128xf32>
    %347 = arith.addf %346, %20 : vector<3x128xf32>
    %348 = arith.negf %347 : vector<3x128xf32>
    %349 = math.exp %348 : vector<3x128xf32>
    %cst_104 = arith.constant 1.000000e+00 : f32
    %350 = vector.broadcast %cst_104 : f32 to vector<3x128xf32>
    %351 = arith.addf %350, %349 : vector<3x128xf32>
    %352 = arith.divf %350, %351 : vector<3x128xf32>
    %353 = math.tanh %347 : vector<3x128xf32>
    %354 = vector.extract_strided_slice %352 {offsets = [0, 0], sizes = [3, 32], strides = [1, 1]} : vector<3x128xf32> to vector<3x32xf32>
    %355 = vector.extract_strided_slice %352 {offsets = [0, 32], sizes = [3, 32], strides = [1, 1]} : vector<3x128xf32> to vector<3x32xf32>
    %356 = vector.extract_strided_slice %352 {offsets = [0, 96], sizes = [3, 32], strides = [1, 1]} : vector<3x128xf32> to vector<3x32xf32>
    %357 = vector.extract_strided_slice %353 {offsets = [0, 64], sizes = [3, 32], strides = [1, 1]} : vector<3x128xf32> to vector<3x32xf32>
    %358 = arith.mulf %355, %321 : vector<3x32xf32>
    %359 = arith.mulf %354, %357 : vector<3x32xf32>
    %360 = arith.addf %358, %359 : vector<3x32xf32>
    %361 = math.tanh %360 : vector<3x32xf32>
    %362 = arith.mulf %356, %361 : vector<3x32xf32>
    %363 = vector.broadcast %c6_i32 : i32 to vector<3x1xi32>
    %364 = arith.cmpi sge, %363, %21 : vector<3x1xi32>
    %c8_i32_105 = arith.constant 8 : i32
    %365 = vector.broadcast %c8_i32_105 : i32 to vector<3x1xi32>
    %366 = arith.addi %365, %21 : vector<3x1xi32>
    %367 = vector.broadcast %c6_i32 : i32 to vector<3x1xi32>
    %368 = arith.cmpi slt, %367, %366 : vector<3x1xi32>
    %369 = arith.andi %364, %368 : vector<3x1xi1>
    %370 = vector.shape_cast %369 : vector<3x1xi1> to vector<3x1xi1>
    %371 = vector.broadcast %370 : vector<3x1xi1> to vector<3x32xi1>
    %372 = arith.select %371, %360, %321 : vector<3x32xi1>, vector<3x32xf32>
    %373 = vector.shape_cast %369 : vector<3x1xi1> to vector<3x1xi1>
    %374 = vector.broadcast %373 : vector<3x1xi1> to vector<3x32xi1>
    %375 = arith.select %374, %362, %324 : vector<3x32xi1>, vector<3x32xf32>
    %376 = vector.extract_strided_slice %375 {offsets = [2, 0], sizes = [1, 32], strides = [1, 1]} : vector<3x32xf32> to vector<1x32xf32>
    %c2_i32_106 = arith.constant 2 : i32
    %377 = arith.subi %c6_i32, %c2_i32_106 : i32
    %c0_i32_107 = arith.constant 0 : i32
    %378 = arith.maxsi %377, %c0_i32_107 : i32
    %379 = arith.index_cast %378 : i32 to index
    %c0_108 = arith.constant 0 : index
    %380 = vector.load %arg14[%379, %c0_108] : memref<8x32xf32, #tpu.memory_space<vmem>>, vector<1x32xf32>
    tpu.vector_store %arg14[%379, %c0_108], %376 {strides = array<i32>} : memref<8x32xf32, #tpu.memory_space<vmem>>, vector<1x32xf32>,
    %c7_i32_109 = arith.constant 7 : i32
    %c7_i32_110 = arith.constant 7 : i32
    %381 = arith.minsi %c7_i32_109, %c7_i32_110 : i32
    %382 = arith.index_cast %381 : i32 to index
    %c0_111 = arith.constant 0 : index
    %383 = vector.load %arg13[%382, %c0_111] : memref<8x128xf32, #tpu.memory_space<vmem>>, vector<1x128xf32>
    %384 = vector.extract_strided_slice %375 {offsets = [0, 0], sizes = [1, 32], strides = [1, 1]} : vector<3x32xf32> to vector<1x32xf32>
    %cst_112 = arith.constant dense<0.000000e+00> : vector<1x128xf32>
    %385 = tpu.matmul %384, %8, %cst_112 {dimension_numbers = #tpu.dot_dimension_numbers<[1], [0], [0], [1], [0, 0, 1, 1], [], []>} : vector<1x32xf32>, vector<32x128xf32>, vector<1x128xf32> -> vector<1x128xf32>
    %386 = arith.addf %383, %385 : vector<1x128xf32>
    %387 = vector.extract_strided_slice %375 {offsets = [0, 0], sizes = [1, 32], strides = [1, 1]} : vector<3x32xf32> to vector<1x32xf32>
    %cst_113 = arith.constant dense<0.000000e+00> : vector<1x128xf32>
    %388 = tpu.matmul %387, %14, %cst_113 {dimension_numbers = #tpu.dot_dimension_numbers<[1], [0], [0], [1], [0, 0, 1, 1], [], []>} : vector<1x32xf32>, vector<32x128xf32>, vector<1x128xf32> -> vector<1x128xf32>
    %389 = vector.extract_strided_slice %375 {offsets = [1, 0], sizes = [1, 32], strides = [1, 1]} : vector<3x32xf32> to vector<1x32xf32>
    %cst_114 = arith.constant dense<0.000000e+00> : vector<1x128xf32>
    %390 = tpu.matmul %389, %10, %cst_114 {dimension_numbers = #tpu.dot_dimension_numbers<[1], [0], [0], [1], [0, 0, 1, 1], [], []>} : vector<1x32xf32>, vector<32x128xf32>, vector<1x128xf32> -> vector<1x128xf32>
    %391 = arith.addf %388, %390 : vector<1x128xf32>
    %392 = vector.extract_strided_slice %375 {offsets = [1, 0], sizes = [1, 32], strides = [1, 1]} : vector<3x32xf32> to vector<1x32xf32>
    %cst_115 = arith.constant dense<0.000000e+00> : vector<1x128xf32>
    %393 = tpu.matmul %392, %16, %cst_115 {dimension_numbers = #tpu.dot_dimension_numbers<[1], [0], [0], [1], [0, 0, 1, 1], [], []>} : vector<1x32xf32>, vector<32x128xf32>, vector<1x128xf32> -> vector<1x128xf32>
    %394 = vector.extract_strided_slice %375 {offsets = [2, 0], sizes = [1, 32], strides = [1, 1]} : vector<3x32xf32> to vector<1x32xf32>
    %cst_116 = arith.constant dense<0.000000e+00> : vector<1x128xf32>
    %395 = tpu.matmul %394, %12, %cst_116 {dimension_numbers = #tpu.dot_dimension_numbers<[1], [0], [0], [1], [0, 0, 1, 1], [], []>} : vector<1x32xf32>, vector<32x128xf32>, vector<1x128xf32> -> vector<1x128xf32>
    %396 = arith.addf %393, %395 : vector<1x128xf32>
    %397 = tpu.concatenate %386, %391, %396 in 0 : vector<1x128xf32>, vector<1x128xf32>, vector<1x128xf32> -> vector<3x128xf32>
    %398 = arith.addf %397, %20 : vector<3x128xf32>
    %399 = arith.negf %398 : vector<3x128xf32>
    %400 = math.exp %399 : vector<3x128xf32>
    %cst_117 = arith.constant 1.000000e+00 : f32
    %401 = vector.broadcast %cst_117 : f32 to vector<3x128xf32>
    %402 = arith.addf %401, %400 : vector<3x128xf32>
    %403 = arith.divf %401, %402 : vector<3x128xf32>
    %404 = math.tanh %398 : vector<3x128xf32>
    %405 = vector.extract_strided_slice %403 {offsets = [0, 0], sizes = [3, 32], strides = [1, 1]} : vector<3x128xf32> to vector<3x32xf32>
    %406 = vector.extract_strided_slice %403 {offsets = [0, 32], sizes = [3, 32], strides = [1, 1]} : vector<3x128xf32> to vector<3x32xf32>
    %407 = vector.extract_strided_slice %403 {offsets = [0, 96], sizes = [3, 32], strides = [1, 1]} : vector<3x128xf32> to vector<3x32xf32>
    %408 = vector.extract_strided_slice %404 {offsets = [0, 64], sizes = [3, 32], strides = [1, 1]} : vector<3x128xf32> to vector<3x32xf32>
    %409 = arith.mulf %406, %372 : vector<3x32xf32>
    %410 = arith.mulf %405, %408 : vector<3x32xf32>
    %411 = arith.addf %409, %410 : vector<3x32xf32>
    %412 = math.tanh %411 : vector<3x32xf32>
    %413 = arith.mulf %407, %412 : vector<3x32xf32>
    %414 = vector.broadcast %c7_i32_109 : i32 to vector<3x1xi32>
    %415 = arith.cmpi sge, %414, %21 : vector<3x1xi32>
    %c8_i32_118 = arith.constant 8 : i32
    %416 = vector.broadcast %c8_i32_118 : i32 to vector<3x1xi32>
    %417 = arith.addi %416, %21 : vector<3x1xi32>
    %418 = vector.broadcast %c7_i32_109 : i32 to vector<3x1xi32>
    %419 = arith.cmpi slt, %418, %417 : vector<3x1xi32>
    %420 = arith.andi %415, %419 : vector<3x1xi1>
    %421 = vector.shape_cast %420 : vector<3x1xi1> to vector<3x1xi1>
    %422 = vector.broadcast %421 : vector<3x1xi1> to vector<3x32xi1>
    %423 = arith.select %422, %411, %372 : vector<3x32xi1>, vector<3x32xf32>
    %424 = vector.shape_cast %420 : vector<3x1xi1> to vector<3x1xi1>
    %425 = vector.broadcast %424 : vector<3x1xi1> to vector<3x32xi1>
    %426 = arith.select %425, %413, %375 : vector<3x32xi1>, vector<3x32xf32>
    %427 = vector.extract_strided_slice %426 {offsets = [2, 0], sizes = [1, 32], strides = [1, 1]} : vector<3x32xf32> to vector<1x32xf32>
    %c2_i32_119 = arith.constant 2 : i32
    %428 = arith.subi %c7_i32_109, %c2_i32_119 : i32
    %c0_i32_120 = arith.constant 0 : i32
    %429 = arith.maxsi %428, %c0_i32_120 : i32
    %430 = arith.index_cast %429 : i32 to index
    %c0_121 = arith.constant 0 : index
    %431 = vector.load %arg14[%430, %c0_121] : memref<8x32xf32, #tpu.memory_space<vmem>>, vector<1x32xf32>
    tpu.vector_store %arg14[%430, %c0_121], %427 {strides = array<i32>} : memref<8x32xf32, #tpu.memory_space<vmem>>, vector<1x32xf32>,
    %c8_i32_122 = arith.constant 8 : i32
    %c7_i32_123 = arith.constant 7 : i32
    %432 = arith.minsi %c8_i32_122, %c7_i32_123 : i32
    %433 = arith.index_cast %432 : i32 to index
    %c0_124 = arith.constant 0 : index
    %434 = vector.load %arg13[%433, %c0_124] : memref<8x128xf32, #tpu.memory_space<vmem>>, vector<1x128xf32>
    %435 = vector.extract_strided_slice %426 {offsets = [0, 0], sizes = [1, 32], strides = [1, 1]} : vector<3x32xf32> to vector<1x32xf32>
    %cst_125 = arith.constant dense<0.000000e+00> : vector<1x128xf32>
    %436 = tpu.matmul %435, %8, %cst_125 {dimension_numbers = #tpu.dot_dimension_numbers<[1], [0], [0], [1], [0, 0, 1, 1], [], []>} : vector<1x32xf32>, vector<32x128xf32>, vector<1x128xf32> -> vector<1x128xf32>
    %437 = arith.addf %434, %436 : vector<1x128xf32>
    %438 = vector.extract_strided_slice %426 {offsets = [0, 0], sizes = [1, 32], strides = [1, 1]} : vector<3x32xf32> to vector<1x32xf32>
    %cst_126 = arith.constant dense<0.000000e+00> : vector<1x128xf32>
    %439 = tpu.matmul %438, %14, %cst_126 {dimension_numbers = #tpu.dot_dimension_numbers<[1], [0], [0], [1], [0, 0, 1, 1], [], []>} : vector<1x32xf32>, vector<32x128xf32>, vector<1x128xf32> -> vector<1x128xf32>
    %440 = vector.extract_strided_slice %426 {offsets = [1, 0], sizes = [1, 32], strides = [1, 1]} : vector<3x32xf32> to vector<1x32xf32>
    %cst_127 = arith.constant dense<0.000000e+00> : vector<1x128xf32>
    %441 = tpu.matmul %440, %10, %cst_127 {dimension_numbers = #tpu.dot_dimension_numbers<[1], [0], [0], [1], [0, 0, 1, 1], [], []>} : vector<1x32xf32>, vector<32x128xf32>, vector<1x128xf32> -> vector<1x128xf32>
    %442 = arith.addf %439, %441 : vector<1x128xf32>
    %443 = vector.extract_strided_slice %426 {offsets = [1, 0], sizes = [1, 32], strides = [1, 1]} : vector<3x32xf32> to vector<1x32xf32>
    %cst_128 = arith.constant dense<0.000000e+00> : vector<1x128xf32>
    %444 = tpu.matmul %443, %16, %cst_128 {dimension_numbers = #tpu.dot_dimension_numbers<[1], [0], [0], [1], [0, 0, 1, 1], [], []>} : vector<1x32xf32>, vector<32x128xf32>, vector<1x128xf32> -> vector<1x128xf32>
    %445 = vector.extract_strided_slice %426 {offsets = [2, 0], sizes = [1, 32], strides = [1, 1]} : vector<3x32xf32> to vector<1x32xf32>
    %cst_129 = arith.constant dense<0.000000e+00> : vector<1x128xf32>
    %446 = tpu.matmul %445, %12, %cst_129 {dimension_numbers = #tpu.dot_dimension_numbers<[1], [0], [0], [1], [0, 0, 1, 1], [], []>} : vector<1x32xf32>, vector<32x128xf32>, vector<1x128xf32> -> vector<1x128xf32>
    %447 = arith.addf %444, %446 : vector<1x128xf32>
    %448 = tpu.concatenate %437, %442, %447 in 0 : vector<1x128xf32>, vector<1x128xf32>, vector<1x128xf32> -> vector<3x128xf32>
    %449 = arith.addf %448, %20 : vector<3x128xf32>
    %450 = arith.negf %449 : vector<3x128xf32>
    %451 = math.exp %450 : vector<3x128xf32>
    %cst_130 = arith.constant 1.000000e+00 : f32
    %452 = vector.broadcast %cst_130 : f32 to vector<3x128xf32>
    %453 = arith.addf %452, %451 : vector<3x128xf32>
    %454 = arith.divf %452, %453 : vector<3x128xf32>
    %455 = math.tanh %449 : vector<3x128xf32>
    %456 = vector.extract_strided_slice %454 {offsets = [0, 0], sizes = [3, 32], strides = [1, 1]} : vector<3x128xf32> to vector<3x32xf32>
    %457 = vector.extract_strided_slice %454 {offsets = [0, 32], sizes = [3, 32], strides = [1, 1]} : vector<3x128xf32> to vector<3x32xf32>
    %458 = vector.extract_strided_slice %454 {offsets = [0, 96], sizes = [3, 32], strides = [1, 1]} : vector<3x128xf32> to vector<3x32xf32>
    %459 = vector.extract_strided_slice %455 {offsets = [0, 64], sizes = [3, 32], strides = [1, 1]} : vector<3x128xf32> to vector<3x32xf32>
    %460 = arith.mulf %457, %423 : vector<3x32xf32>
    %461 = arith.mulf %456, %459 : vector<3x32xf32>
    %462 = arith.addf %460, %461 : vector<3x32xf32>
    %463 = math.tanh %462 : vector<3x32xf32>
    %464 = arith.mulf %458, %463 : vector<3x32xf32>
    %465 = vector.broadcast %c8_i32_122 : i32 to vector<3x1xi32>
    %466 = arith.cmpi sge, %465, %21 : vector<3x1xi32>
    %c8_i32_131 = arith.constant 8 : i32
    %467 = vector.broadcast %c8_i32_131 : i32 to vector<3x1xi32>
    %468 = arith.addi %467, %21 : vector<3x1xi32>
    %469 = vector.broadcast %c8_i32_122 : i32 to vector<3x1xi32>
    %470 = arith.cmpi slt, %469, %468 : vector<3x1xi32>
    %471 = arith.andi %466, %470 : vector<3x1xi1>
    %472 = vector.shape_cast %471 : vector<3x1xi1> to vector<3x1xi1>
    %473 = vector.broadcast %472 : vector<3x1xi1> to vector<3x32xi1>
    %474 = arith.select %473, %462, %423 : vector<3x32xi1>, vector<3x32xf32>
    %475 = vector.shape_cast %471 : vector<3x1xi1> to vector<3x1xi1>
    %476 = vector.broadcast %475 : vector<3x1xi1> to vector<3x32xi1>
    %477 = arith.select %476, %464, %426 : vector<3x32xi1>, vector<3x32xf32>
    %478 = vector.extract_strided_slice %477 {offsets = [2, 0], sizes = [1, 32], strides = [1, 1]} : vector<3x32xf32> to vector<1x32xf32>
    %c2_i32_132 = arith.constant 2 : i32
    %479 = arith.subi %c8_i32_122, %c2_i32_132 : i32
    %c0_i32_133 = arith.constant 0 : i32
    %480 = arith.maxsi %479, %c0_i32_133 : i32
    %481 = arith.index_cast %480 : i32 to index
    %c0_134 = arith.constant 0 : index
    %482 = vector.load %arg14[%481, %c0_134] : memref<8x32xf32, #tpu.memory_space<vmem>>, vector<1x32xf32>
    tpu.vector_store %arg14[%481, %c0_134], %478 {strides = array<i32>} : memref<8x32xf32, #tpu.memory_space<vmem>>, vector<1x32xf32>,
    %c9_i32 = arith.constant 9 : i32
    %c7_i32_135 = arith.constant 7 : i32
    %483 = arith.minsi %c9_i32, %c7_i32_135 : i32
    %484 = arith.index_cast %483 : i32 to index
    %c0_136 = arith.constant 0 : index
    %485 = vector.load %arg13[%484, %c0_136] : memref<8x128xf32, #tpu.memory_space<vmem>>, vector<1x128xf32>
    %486 = vector.extract_strided_slice %477 {offsets = [0, 0], sizes = [1, 32], strides = [1, 1]} : vector<3x32xf32> to vector<1x32xf32>
    %cst_137 = arith.constant dense<0.000000e+00> : vector<1x128xf32>
    %487 = tpu.matmul %486, %8, %cst_137 {dimension_numbers = #tpu.dot_dimension_numbers<[1], [0], [0], [1], [0, 0, 1, 1], [], []>} : vector<1x32xf32>, vector<32x128xf32>, vector<1x128xf32> -> vector<1x128xf32>
    %488 = arith.addf %485, %487 : vector<1x128xf32>
    %489 = vector.extract_strided_slice %477 {offsets = [0, 0], sizes = [1, 32], strides = [1, 1]} : vector<3x32xf32> to vector<1x32xf32>
    %cst_138 = arith.constant dense<0.000000e+00> : vector<1x128xf32>
    %490 = tpu.matmul %489, %14, %cst_138 {dimension_numbers = #tpu.dot_dimension_numbers<[1], [0], [0], [1], [0, 0, 1, 1], [], []>} : vector<1x32xf32>, vector<32x128xf32>, vector<1x128xf32> -> vector<1x128xf32>
    %491 = vector.extract_strided_slice %477 {offsets = [1, 0], sizes = [1, 32], strides = [1, 1]} : vector<3x32xf32> to vector<1x32xf32>
    %cst_139 = arith.constant dense<0.000000e+00> : vector<1x128xf32>
    %492 = tpu.matmul %491, %10, %cst_139 {dimension_numbers = #tpu.dot_dimension_numbers<[1], [0], [0], [1], [0, 0, 1, 1], [], []>} : vector<1x32xf32>, vector<32x128xf32>, vector<1x128xf32> -> vector<1x128xf32>
    %493 = arith.addf %490, %492 : vector<1x128xf32>
    %494 = vector.extract_strided_slice %477 {offsets = [1, 0], sizes = [1, 32], strides = [1, 1]} : vector<3x32xf32> to vector<1x32xf32>
    %cst_140 = arith.constant dense<0.000000e+00> : vector<1x128xf32>
    %495 = tpu.matmul %494, %16, %cst_140 {dimension_numbers = #tpu.dot_dimension_numbers<[1], [0], [0], [1], [0, 0, 1, 1], [], []>} : vector<1x32xf32>, vector<32x128xf32>, vector<1x128xf32> -> vector<1x128xf32>
    %496 = vector.extract_strided_slice %477 {offsets = [2, 0], sizes = [1, 32], strides = [1, 1]} : vector<3x32xf32> to vector<1x32xf32>
    %cst_141 = arith.constant dense<0.000000e+00> : vector<1x128xf32>
    %497 = tpu.matmul %496, %12, %cst_141 {dimension_numbers = #tpu.dot_dimension_numbers<[1], [0], [0], [1], [0, 0, 1, 1], [], []>} : vector<1x32xf32>, vector<32x128xf32>, vector<1x128xf32> -> vector<1x128xf32>
    %498 = arith.addf %495, %497 : vector<1x128xf32>
    %499 = tpu.concatenate %488, %493, %498 in 0 : vector<1x128xf32>, vector<1x128xf32>, vector<1x128xf32> -> vector<3x128xf32>
    %500 = arith.addf %499, %20 : vector<3x128xf32>
    %501 = arith.negf %500 : vector<3x128xf32>
    %502 = math.exp %501 : vector<3x128xf32>
    %cst_142 = arith.constant 1.000000e+00 : f32
    %503 = vector.broadcast %cst_142 : f32 to vector<3x128xf32>
    %504 = arith.addf %503, %502 : vector<3x128xf32>
    %505 = arith.divf %503, %504 : vector<3x128xf32>
    %506 = math.tanh %500 : vector<3x128xf32>
    %507 = vector.extract_strided_slice %505 {offsets = [0, 0], sizes = [3, 32], strides = [1, 1]} : vector<3x128xf32> to vector<3x32xf32>
    %508 = vector.extract_strided_slice %505 {offsets = [0, 32], sizes = [3, 32], strides = [1, 1]} : vector<3x128xf32> to vector<3x32xf32>
    %509 = vector.extract_strided_slice %505 {offsets = [0, 96], sizes = [3, 32], strides = [1, 1]} : vector<3x128xf32> to vector<3x32xf32>
    %510 = vector.extract_strided_slice %506 {offsets = [0, 64], sizes = [3, 32], strides = [1, 1]} : vector<3x128xf32> to vector<3x32xf32>
    %511 = arith.mulf %508, %474 : vector<3x32xf32>
    %512 = arith.mulf %507, %510 : vector<3x32xf32>
    %513 = arith.addf %511, %512 : vector<3x32xf32>
    %514 = math.tanh %513 : vector<3x32xf32>
    %515 = arith.mulf %509, %514 : vector<3x32xf32>
    %516 = vector.broadcast %c9_i32 : i32 to vector<3x1xi32>
    %517 = arith.cmpi sge, %516, %21 : vector<3x1xi32>
    %c8_i32_143 = arith.constant 8 : i32
    %518 = vector.broadcast %c8_i32_143 : i32 to vector<3x1xi32>
    %519 = arith.addi %518, %21 : vector<3x1xi32>
    %520 = vector.broadcast %c9_i32 : i32 to vector<3x1xi32>
    %521 = arith.cmpi slt, %520, %519 : vector<3x1xi32>
    %522 = arith.andi %517, %521 : vector<3x1xi1>
    %523 = vector.shape_cast %522 : vector<3x1xi1> to vector<3x1xi1>
    %524 = vector.broadcast %523 : vector<3x1xi1> to vector<3x32xi1>
    %525 = arith.select %524, %513, %474 : vector<3x32xi1>, vector<3x32xf32>
    %526 = vector.shape_cast %522 : vector<3x1xi1> to vector<3x1xi1>
    %527 = vector.broadcast %526 : vector<3x1xi1> to vector<3x32xi1>
    %528 = arith.select %527, %515, %477 : vector<3x32xi1>, vector<3x32xf32>
    %529 = vector.extract_strided_slice %528 {offsets = [2, 0], sizes = [1, 32], strides = [1, 1]} : vector<3x32xf32> to vector<1x32xf32>
    %c2_i32_144 = arith.constant 2 : i32
    %530 = arith.subi %c9_i32, %c2_i32_144 : i32
    %c0_i32_145 = arith.constant 0 : i32
    %531 = arith.maxsi %530, %c0_i32_145 : i32
    %532 = arith.index_cast %531 : i32 to index
    %c0_146 = arith.constant 0 : index
    %533 = vector.load %arg14[%532, %c0_146] : memref<8x32xf32, #tpu.memory_space<vmem>>, vector<1x32xf32>
    tpu.vector_store %arg14[%532, %c0_146], %529 {strides = array<i32>} : memref<8x32xf32, #tpu.memory_space<vmem>>, vector<1x32xf32>,
    %c10_i32 = arith.constant 10 : i32
    %c0_147 = arith.constant 0 : index
    %c0_148 = arith.constant 0 : index
    %534 = vector.load %arg14[%c0_147, %c0_148] : memref<8x32xf32, #tpu.memory_space<vmem>>, vector<8x32xf32>
    %c0_149 = arith.constant 0 : index
    %c0_150 = arith.constant 0 : index
    %535 = vector.load %arg6[%c0_149, %c0_150] : memref<32x16xf32, #tpu.memory_space<vmem>>, vector<32x16xf32>
    %cst_151 = arith.constant dense<0.000000e+00> : vector<8x16xf32>
    %536 = tpu.matmul %534, %535, %cst_151 {dimension_numbers = #tpu.dot_dimension_numbers<[1], [0], [0], [1], [0, 0, 1, 1], [], []>} : vector<8x32xf32>, vector<32x16xf32>, vector<8x16xf32> -> vector<8x16xf32>
    %c0_152 = arith.constant 0 : index
    %c0_153 = arith.constant 0 : index
    %537 = vector.load %arg7[%c0_152, %c0_153] : memref<1x16xf32, #tpu.memory_space<vmem>>, vector<1x16xf32>
    %538 = vector.broadcast %537 : vector<1x16xf32> to vector<8x16xf32>
    %539 = arith.addf %536, %538 : vector<8x16xf32>
    %cst_154 = arith.constant 0.000000e+00 : f32
    %540 = vector.broadcast %cst_154 : f32 to vector<8x16xf32>
    %541 = arith.cmpf ogt, %539, %540 : vector<8x16xf32>
    %cst_155 = arith.constant 0.00999999977 : f32
    %542 = vector.broadcast %cst_155 : f32 to vector<8x16xf32>
    %543 = arith.mulf %542, %539 : vector<8x16xf32>
    %544 = arith.select %541, %539, %543 : vector<8x16xi1>, vector<8x16xf32>
    %c0_156 = arith.constant 0 : index
    %c0_157 = arith.constant 0 : index
    %545 = vector.load %arg8[%c0_156, %c0_157] : memref<16x8xf32, #tpu.memory_space<vmem>>, vector<16x8xf32>
    %cst_158 = arith.constant dense<0.000000e+00> : vector<8x8xf32>
    %546 = tpu.matmul %544, %545, %cst_158 {dimension_numbers = #tpu.dot_dimension_numbers<[1], [0], [0], [1], [0, 0, 1, 1], [], []>} : vector<8x16xf32>, vector<16x8xf32>, vector<8x8xf32> -> vector<8x8xf32>
    %c0_159 = arith.constant 0 : index
    %c0_160 = arith.constant 0 : index
    %547 = vector.load %arg9[%c0_159, %c0_160] : memref<1x8xf32, #tpu.memory_space<vmem>>, vector<1x8xf32>
    %548 = vector.broadcast %547 : vector<1x8xf32> to vector<8x8xf32>
    %549 = arith.addf %546, %548 : vector<8x8xf32>
    %cst_161 = arith.constant 0.000000e+00 : f32
    %550 = vector.broadcast %cst_161 : f32 to vector<8x8xf32>
    %551 = arith.cmpf ogt, %549, %550 : vector<8x8xf32>
    %cst_162 = arith.constant 0.00999999977 : f32
    %552 = vector.broadcast %cst_162 : f32 to vector<8x8xf32>
    %553 = arith.mulf %552, %549 : vector<8x8xf32>
    %554 = arith.select %551, %549, %553 : vector<8x8xi1>, vector<8x8xf32>
    %c0_163 = arith.constant 0 : index
    %c0_164 = arith.constant 0 : index
    %555 = vector.load %arg10[%c0_163, %c0_164] : memref<8x1xf32, #tpu.memory_space<vmem>>, vector<8x1xf32>
    %cst_165 = arith.constant dense<0.000000e+00> : vector<8x1xf32>
    %556 = tpu.matmul %554, %555, %cst_165 {dimension_numbers = #tpu.dot_dimension_numbers<[1], [0], [0], [1], [0, 0, 1, 1], [], []>} : vector<8x8xf32>, vector<8x1xf32>, vector<8x1xf32> -> vector<8x1xf32>
    %c0_166 = arith.constant 0 : index
    %c0_167 = arith.constant 0 : index
    %557 = vector.load %arg11[%c0_166, %c0_167] : memref<1x1xf32, #tpu.memory_space<vmem>>, vector<1x1xf32>
    %558 = vector.broadcast %557 : vector<1x1xf32> to vector<8x1xf32>
    %559 = arith.addf %556, %558 : vector<8x1xf32>
    %560 = arith.negf %559 : vector<8x1xf32>
    %561 = math.exp %560 : vector<8x1xf32>
    %cst_168 = arith.constant 1.000000e+00 : f32
    %562 = vector.broadcast %cst_168 : f32 to vector<8x1xf32>
    %563 = arith.addf %562, %561 : vector<8x1xf32>
    %564 = arith.divf %562, %563 : vector<8x1xf32>
    %c0_169 = arith.constant 0 : index
    %c0_170 = arith.constant 0 : index
    %565 = vector.load %arg12[%c0_169, %c0_170] : memref<8x1xf32, #tpu.memory_space<vmem>>, vector<8x1xf32>
    tpu.vector_store %arg12[%c0_169, %c0_170], %564 {strides = array<i32>} : memref<8x1xf32, #tpu.memory_space<vmem>>, vector<8x1xf32>,
    return
  }
  func.func @transform_0(%arg0: i32) -> (i32, i32) {
    %c0_i32 = arith.constant 0 : i32
    %c0_i32_0 = arith.constant 0 : i32
    %c0_i32_1 = arith.constant 0 : i32
    return %c0_i32, %c0_i32_0 : i32, i32
  }
  func.func @transform_1(%arg0: i32) -> (i32, i32) {
    %c0_i32 = arith.constant 0 : i32
    %c0_i32_0 = arith.constant 0 : i32
    %c0_i32_1 = arith.constant 0 : i32
    return %c0_i32, %c0_i32_0 : i32, i32
  }
  func.func @transform_2(%arg0: i32) -> (i32, i32, i32) {
    %c0_i32 = arith.constant 0 : i32
    %c0_i32_0 = arith.constant 0 : i32
    %c0_i32_1 = arith.constant 0 : i32
    %c0_i32_2 = arith.constant 0 : i32
    return %c0_i32, %c0_i32_0, %c0_i32_1 : i32, i32, i32
  }
  func.func @transform_3(%arg0: i32) -> (i32, i32, i32) {
    %c0_i32 = arith.constant 0 : i32
    %c0_i32_0 = arith.constant 0 : i32
    %c0_i32_1 = arith.constant 0 : i32
    %c0_i32_2 = arith.constant 0 : i32
    return %c0_i32, %c0_i32_0, %c0_i32_1 : i32, i32, i32
  }
  func.func @transform_4(%arg0: i32) -> (i32, i32) {
    %c0_i32 = arith.constant 0 : i32
    %c0_i32_0 = arith.constant 0 : i32
    %c0_i32_1 = arith.constant 0 : i32
    return %c0_i32, %c0_i32_0 : i32, i32
  }
  func.func @transform_5(%arg0: i32) -> (i32, i32) {
    %c0_i32 = arith.constant 0 : i32
    %c0_i32_0 = arith.constant 0 : i32
    %c0_i32_1 = arith.constant 0 : i32
    return %c0_i32, %c0_i32_0 : i32, i32
  }
  func.func @transform_6(%arg0: i32) -> (i32, i32) {
    %c0_i32 = arith.constant 0 : i32
    %c0_i32_0 = arith.constant 0 : i32
    %c0_i32_1 = arith.constant 0 : i32
    return %c0_i32, %c0_i32_0 : i32, i32
  }
  func.func @transform_7(%arg0: i32) -> (i32, i32) {
    %c0_i32 = arith.constant 0 : i32
    %c0_i32_0 = arith.constant 0 : i32
    %c0_i32_1 = arith.constant 0 : i32
    return %c0_i32, %c0_i32_0 : i32, i32
  }
  func.func @transform_8(%arg0: i32) -> (i32, i32) {
    %c0_i32 = arith.constant 0 : i32
    %c0_i32_0 = arith.constant 0 : i32
    %c0_i32_1 = arith.constant 0 : i32
    return %c0_i32, %c0_i32_0 : i32, i32
  }
  func.func @transform_9(%arg0: i32) -> (i32, i32) {
    %c0_i32 = arith.constant 0 : i32
    %c0_i32_0 = arith.constant 0 : i32
    %c0_i32_1 = arith.constant 0 : i32
    return %c0_i32, %c0_i32_0 : i32, i32
  }
  func.func @transform_10(%arg0: i32) -> (i32, i32) {
    %c0_i32 = arith.constant 0 : i32
    %c0_i32_0 = arith.constant 0 : i32
    %c0_i32_1 = arith.constant 0 : i32
    return %c0_i32, %c0_i32_0 : i32, i32
  }
  func.func @transform_11(%arg0: i32) -> (i32, i32) {
    %c0_i32 = arith.constant 0 : i32
    %c0_i32_0 = arith.constant 0 : i32
    %c0_i32_1 = arith.constant 0 : i32
    return %c0_i32, %c0_i32_0 : i32, i32
  }
}

</mosaic_0001>

<bundles_post_ra>
// kernel: tpu_custom_call.1
= control target key start
LH: loop header
LB: loop body
LE: loop exit
PB: predicated region body
PF: predicated region fallthrough
CT: control target
= control target key end

     0   :  { %s6857_s0 = inlined_call_operand.hbm [shape: f32[8,16], index: 0, kind: input, shape index: {}]   ;;  %s6858_s1 = inlined_call_operand.hbm [shape: f32[16,128], index: 1, kind: input, shape index: {}]   ;;  %s6859_s2 = inlined_call_operand.hbm [shape: f32[2,32,128], index: 2, kind: input, shape index: {}]   ;;  %s6860_s3 = inlined_call_operand.vmem [shape: f32[3,32,128], index: 3, kind: input, shape index: {}]   ;;  %s6861_s4 = inlined_call_operand.hbm [shape: f32[3,128], index: 4, kind: input, shape index: {}]   ;;  %s6862_s5 = inlined_call_operand.vmem [shape: f32[32,16], index: 5, kind: input, shape index: {}]   ;;  %s6863_s6 = inlined_call_operand.vmem [shape: f32[1,16], index: 6, kind: input, shape index: {}]   ;;  %s6864_s7 = inlined_call_operand.vmem [shape: f32[16,8], index: 7, kind: input, shape index: {}]   ;;  %s6865_s8 = inlined_call_operand.vmem [shape: f32[1,8], index: 8, kind: input, shape index: {}]   ;;  %s6866_s9 = inlined_call_operand.vmem [shape: f32[8,1], index: 9, kind: input, shape index: {}]   ;;  %s6867_s10 = inlined_call_operand.<no memory space> [shape: f32[1,1], index: 10, kind: input, shape index: {}]   ;;  %s6868_s11 = inlined_call_operand.vmem [shape: f32[8,1], index: 11, kind: output, shape index: {}]  }
   0x1   :  { %v16_v0 = vstv %s6867_s10 }
   0x2   :  { %17 = vst [vmem:[#allocation4] sm:$0x1] %v16_v0 }
   0x3   :  { %18 = vsyncpa [#allocation6], 0 }
   0x4   :  { %19 = vsyncpa [#allocation8], 0 }
   0x5   :  { %20 = vsyncpa [#allocation11], 0  ;;  %s6020_s19 = smov [#allocation7]   ;;  %s5926_s23 = scalar_lea.hbm %s6858_s1, 256 }
   0x6   :  { %s36_s20 = sshll.u32 %s6020_s19, 4  ;;  %p5927_p0 = scmp.ne.s32.totalorder %s6858_s1, %s5926_s23  ;;  %s37_s20 = int_to_ptr.vmem [resolvable:$true] %s36_s20 }
   0x7   :  { %p5930_p1 = scmp.lt.u32.totalorder %s5926_s23, %s6858_s1 }
   0x9   :  { %p5932_p2 = pnand %p5930_p1, %p5927_p0 }
   0xb   :  { %5935 = shalt.err (!%p5932_p2)
}
   0xc   :  { %s5936_s10 = scalar_lea.vmem %s37_s20, 256  ;;  %p5941_p4 = scmp.lt.s32.totalorder %s37_s20, %s37_s20 }
   0xd   :  { %p5937_p3 = scmp.ne.s32.totalorder %s37_s20, %s5936_s10  ;;  %p5942_p5 = scmp.lt.s32.totalorder %s5936_s10, %s5936_s10 }
   0xf   :  { %p5943_p6 = por %p5942_p5, %p5941_p4 }
  0x11   :  { %p5944_p7 = pnand %p5943_p6, %p5937_p3 }
  0x13   :  { %5947 = shalt.err (!%p5944_p7)
}
  0x14   :  { %s6021_s28 = smov 128   ;;  %s6022_s29 = smov 8  }
  0x15   :  { %42 = dma.hbm_to_vmem [thread:$0]  %s6858_s1, 256, %s37_s20, [#allocation8], %s6021_s28, %s6021_s28, %s6022_s29  }
  0x16   :  { %s6023_s13 = smov [#allocation5]   ;;  %s6024_s15 = smov [#allocation9]  }
  0x17   :  { %s27_s14 = sshll.u32 %s6023_s13, 4  ;;  %s48_s16 = sshll.u32 %s6024_s15, 4  ;;  %s28_s14 = int_to_ptr.vmem [resolvable:$true] %s27_s14  ;;  %s49_s16 = int_to_ptr.vmem [resolvable:$true] %s48_s16 }
  0x18   :  { %s5948_s19 = scalar_lea.hbm %s6857_s0, 128 }
  0x19   :  { %p5949_p8 = scmp.ne.s32.totalorder %s6857_s0, %s5948_s19  ;;  %p5952_p9 = scmp.lt.u32.totalorder %s5948_s19, %s6857_s0 }
  0x1b   :  { %p5954_p10 = pnand %p5952_p9, %p5949_p8 }
  0x1d   :  { %5957 = shalt.err (!%p5954_p10)
}
  0x1e   :  { %s5958_s1 = scalar_lea.vmem %s28_s14, 128  ;;  %p5963_p12 = scmp.lt.s32.totalorder %s28_s14, %s28_s14 }
  0x1f   :  { %p5959_p11 = scmp.ne.s32.totalorder %s28_s14, %s5958_s1  ;;  %p5964_p13 = scmp.lt.s32.totalorder %s5958_s1, %s5958_s1 }
  0x21   :  { %p5965_p0 = por %p5964_p13, %p5963_p12 }
  0x23   :  { %p5966_p1 = pnand %p5965_p0, %p5959_p11 }
  0x25   :  { %5969 = shalt.err (!%p5966_p1)
}
  0x26   :  { %30 = dma.hbm_to_vmem [thread:$0]  %s6857_s0, 128, %s28_s14, [#allocation6]  }
  0x27   :  { %s5970_s10 = scalar_lea.hbm %s6859_s2, 1024 }
  0x28   :  { %p5971_p2 = scmp.ne.s32.totalorder %s6859_s2, %s5970_s10  ;;  %p5974_p3 = scmp.lt.u32.totalorder %s5970_s10, %s6859_s2 }
  0x2a   :  { %p5976_p4 = pnand %p5974_p3, %p5971_p2 }
  0x2c   :  { %5979 = shalt.err (!%p5976_p4)
}
  0x2d   :  { %s5980_s17 = scalar_lea.vmem %s49_s16, 1024  ;;  %p5985_p6 = scmp.lt.s32.totalorder %s49_s16, %s49_s16 }
  0x2e   :  { %p5981_p5 = scmp.ne.s32.totalorder %s49_s16, %s5980_s17  ;;  %p5986_p7 = scmp.lt.s32.totalorder %s5980_s17, %s5980_s17 }
  0x30   :  { %p5987_p8 = por %p5986_p7, %p5985_p6 }
  0x32   :  { %p5988_p9 = pnand %p5987_p8, %p5981_p5 }
  0x34   :  { %5991 = shalt.err (!%p5988_p9)
}
  0x35   :  { %54 = dma.hbm_to_vmem [thread:$0]  %s6859_s2, 1024, %s49_s16, [#allocation8], %s6021_s28, %s6021_s28, %s6022_s29  }
  0x36   :  { %s6025_s18 = smov [#allocation10]   ;;  %s5992_s23 = scalar_lea.hbm %s6861_s4, 64 }
  0x37   :  { %s63_s19 = sshll.u32 %s6025_s18, 4  ;;  %p5993_p10 = scmp.ne.s32.totalorder %s6861_s4, %s5992_s23  ;;  %s64_s19 = int_to_ptr.vmem [resolvable:$true] %s63_s19 }
  0x38   :  { %p5996_p11 = scmp.lt.u32.totalorder %s5992_s23, %s6861_s4 }
  0x3a   :  { %p5998_p12 = pnand %p5996_p11, %p5993_p10 }
  0x3c   :  { %6001 = shalt.err (!%p5998_p12)
}
  0x3d   :  { %s6002_s26 = scalar_lea.vmem %s64_s19, 64  ;;  %p6007_p0 = scmp.lt.s32.totalorder %s64_s19, %s64_s19 }
  0x3e   :  { %p6003_p13 = scmp.ne.s32.totalorder %s64_s19, %s6002_s26  ;;  %p6008_p1 = scmp.lt.s32.totalorder %s6002_s26, %s6002_s26 }
  0x40   :  { %p6009_p2 = por %p6008_p1, %p6007_p0 }
  0x42   :  { %p6010_p3 = pnand %p6009_p2, %p6003_p13 }
  0x44   :  { %6013 = shalt.err (!%p6010_p3)
}
  0x45   :  { %66 = dma.hbm_to_vmem [thread:$0]  %s6861_s4, 64, %s64_s19, [#allocation11]  }
  0x46   :  { %6014 = dma.done.wait [#allocation6], 128  }
  0x47   :  { %6015 = vsyncadd [#allocation6], 4294967168 }
  0x48   :  { %6016 = dma.done.wait [#allocation8], 1280  }
  0x49   :  { %6017 = vsyncadd [#allocation8], 4294966016 }
  0x4a   :  { %6018 = dma.done.wait [#allocation11], 64  }
  0x4b   :  { %6019 = vsyncadd [#allocation11], 4294967232  ;;  %v6026_v1 = vmov 0.0|0.0   ;;  %vm6027_vm0 = vmmov 0   ;;  %v6028_v2 = vmov 0.0   ;;  %v92_v3 = vld [vmem:[#allocation7] sm:$0xff] }
  0x4c   :  { %5479 = vmatprep.subr.bf16.mxu0 %v6026_v1  ;;  %5482 = vmatprep.subr.bf16.mxu1 %v6026_v1  ;;  %v93_v4 = vld [vmem:[#allocation7 + $0x8] sm:$0xff]  ;;  %v176_v8 = vld [vmem:[%s6860_s3 + $0x10] sm:$0xff]  ;;  %v177_v10 = vld [vmem:[%s6860_s3 + $0x18] sm:$0xff]  ;;  %vm99_vm1 = vcmask 130048   ;;  %vm205_vm2 = vcmask 1040384   ;;  %vm207_vm3 = vcmask 1041408  }
  0x4d   :  { %4903 = vmatprep.mubr.msk.f32.mxu0 %vm6027_vm0, %v6028_v2  ;;  %4914 = vmatprep.mubr.msk.f32.mxu1 %vm6027_vm0, %v6028_v2  ;;  %v174_v5 = vld [vmem:[%s6860_s3] sm:$0xff]  ;;  %v5480_v6 = vpack.c.bf16 %v93_v4, %v92_v3  ;;  %v175_v7 = vld [vmem:[%s6860_s3 + $0x8] sm:$0xff]  ;;  %v91_v13 = vld [vmem:[#allocation5] sm:$0xff]  ;;  %v6178_v15 = vpack.c.bf16 %v177_v10, %v176_v8  ;;  %s6030_s4 = smov 32   ;;  %v209_v10 = vlaneseq  ;;  %vm612_vm5 = vcmask 256002  }
  0x4e   :  { %v6163_v9 = vpack.c.bf16 %v175_v7, %v174_v5  ;;  %v4566_v11 = vld [vmem:[%s6860_s3 + $0x20] sm:$0xff]  ;;  %v4567_v12 = vld [vmem:[%s6860_s3 + $0x28] sm:$0xff]  ;;  %v4568_v16 = vld [vmem:[%s6860_s3 + $0x30] sm:$0xff]  ;;  %vm212_vm6 = vcmask 261120  }
  0x4f   :  { %5481 = vmatpush3.bf16.msra.mxu0 %v5480_v6  ;;  %v6174_v14 = vpack.c.bf16 %v4567_v12, %v4566_v11  ;;  %v4569_v17 = vld [vmem:[%s6860_s3 + $0x38] sm:$0xff]  ;;  %v4570_v18 = vld [vmem:[%s6860_s3 + $0x40] sm:$0xff]  ;;  %v4571_v19 = vld [vmem:[%s6860_s3 + $0x48] sm:$0xff]  ;;  %v6270_v11 = vshrl.u32 %v209_v10, 7 }
  0x50   :  { %5484 = vmatpush3.bf16.msra.mxu1 %v6163_v9  ;;  %5488 = vmatprep.subr.bf16.mxu0 %v6026_v1  ;;  %v6195_v20 = vpack.c.bf16 %v4569_v17, %v4568_v16  ;;  %v6201_v21 = vpack.c.bf16 %v4571_v19, %v4570_v18  ;;  %v188_v22 = vld [vmem:[#allocation9] sm:$0xff]  ;;  %v189_v23 = vld [vmem:[#allocation9 + $0x8] sm:$0xff]  ;;  %v190_v28 = vld [vmem:[#allocation9 + $0x10] sm:$0xff] }
  0x51   :  { %5485 = vmatprep.subr.bf16.mxu1 %v6026_v1  ;;  %v4572_v24 = vld [vmem:[%s6860_s3 + $0x50] sm:$0xff]  ;;  %v4573_v25 = vld [vmem:[%s6860_s3 + $0x58] sm:$0xff]  ;;  %v6212_v26 = vpack.c.bf16 %v189_v23, %v188_v22  ;;  %v191_v29 = vld [vmem:[#allocation9 + $0x18] sm:$0xff]  ;;  %s6029_s3 = smov 64   ;;  %vm600_vm4 = vcmp.le.s32.totalorder %v6270_v11, 0  ;;  %vm1011_vm7 = vcmp.le.s32.totalorder %v6270_v11, 1 }
  0x52   :  { %4904 = vmatmul.mubr.msk.f32.vlgmr.msra.gmra.mrb[0].mxu0 %vm99_vm1, %v91_v13  ;;  %v6216_v27 = vpack.c.bf16 %v4573_v25, %v4572_v24  ;;  %v193_v30 = vld [vmem:[#allocation9 + $0x20] sm:$0xff]  ;;  %v194_v31 = vld [vmem:[#allocation9 + $0x28] sm:$0xff]  ;;  %v6223_v32 = vpack.c.bf16 %v191_v29, %v190_v28  ;;  %v195_v34 = vld [vmem:[#allocation9 + $0x30] sm:$0xff]  ;;  %vm1420_vm8 = vcmp.le.s32.totalorder %v6270_v11, 2  ;;  %vm1829_vm9 = vcmp.le.s32.totalorder %v6270_v11, 3 }
  0x53   :  { %5490 = vmatpush3.bf16.msra.mxu0 %v6174_v14  ;;  %4925 = vmatprep.mubr.msk.f32.mxu0 %vm6027_vm0, %v6028_v2  ;;  %v6229_v33 = vpack.c.bf16 %v194_v31, %v193_v30  ;;  %v196_v35 = vld [vmem:[#allocation9 + $0x38] sm:$0xff]  ;;  %v4564_v37 = vld [vmem:[#allocation10] ss:$0 sm:$0xff]  ;;  %v197_v43 = vld [vmem:[#allocation10 + $0x1] sm:$0x1]  ;;  %vm2238_vm10 = vcmp.le.s32.totalorder %v6270_v11, 4 }
  0x54   :  { %5487 = vmatpush3.bf16.msra.mxu1 %v6178_v15  ;;  %5491 = vmatprep.subr.bf16.mxu0 %v6026_v1  ;;  %v6235_v36 = vpack.c.bf16 %v196_v35, %v195_v34  ;;  %v198_v45 = vld [vmem:[#allocation10 + $0x2] sm:$0x1]  ;;  %v200_v46 = vrot.slane %v197_v43, 7  ;;  %vm2647_vm11 = vcmp.le.s32.totalorder %v6270_v11, 5  ;;  %vm3056_vm12 = vcmp.le.s32.totalorder %v6270_v11, 6 }
  0x55   :  { %5500 = vmatprep.subr.bf16.mxu1 %v6026_v1  ;;  %v203_v51 = vrot.slane %v198_v45, 6 }
  0x56   :  { %v206_v53 = vsel %vm205_vm2, 0.0, %v200_v46 }
  0x57   :  { %4915 = vmatmul.mubr.f32.vlgmr.msra.gmra.mrb[0].mxu1 %v6028_v2  ;;  %5493 = vmatpush3.bf16.msra.mxu0 %v6195_v20  ;;  %v6260_v55 = vsel %vm207_vm3, %v206_v53, %v203_v51 }
  0x58   :  { %5502 = vmatpush3.bf16.msra.mxu1 %v6201_v21  ;;  %5494 = vmatprep.subr.bf16.mxu0 %v6026_v1 }
  0x59   :  { %5503 = vmatprep.subr.bf16.mxu1 %v6026_v1  ;;  %4947 = vmatprep.mubr.msk.f32.mxu1 %vm6027_vm0, %v6028_v2 }
  0x5a   :  { %4926 = vmatmul.mubr.f32.vlgmr.msra.gmra.mrb[2].mxu0 %v6028_v2 }
  0x5b   :  { %5496 = vmatpush3.bf16.msra.mxu0 %v6212_v26  ;;  %4936 = vmatprep.mubr.msk.f32.mxu0 %vm6027_vm0, %v6028_v2 }
  0x5c   :  { %5505 = vmatpush3.bf16.msra.mxu1 %v6216_v27  ;;  %5497 = vmatprep.subr.bf16.mxu0 %v6026_v1 }
  0x5d   :  { %5506 = vmatprep.subr.bf16.mxu1 %v6026_v1 }
  0x5f   :  { %4948 = vmatmul.mubr.f32.vlgmr.msra.gmra.mrb[2].mxu1 %v6028_v2  ;;  %5499 = vmatpush3.bf16.msra.mxu0 %v6223_v32 }
  0x60   :  { %5508 = vmatpush3.bf16.msra.mxu1 %v6229_v33  ;;  %4958 = vmatprep.mubr.msk.f32.mxu1 %vm6027_vm0, %v6028_v2 }
  0x61   :  { %5509 = vmatprep.subr.bf16.mxu1 %v6026_v1  ;;  %5512 = vmatprep.subr.bf16.mxu0 %v6026_v1 }
  0x62   :  { %4937 = vmatmul.mubr.f32.vlgmr.msra.gmra.mrb[2].mxu0 %v6028_v2 }
  0x63   :  { %5514 = vmatpush3.bf16.msra.mxu0 %v6163_v9  ;;  %4969 = vmatprep.mubr.msk.f32.mxu0 %vm6027_vm0, %v6028_v2 }
  0x64   :  { %5511 = vmatpush3.bf16.msra.mxu1 %v6235_v36  ;;  %5515 = vmatprep.subr.bf16.mxu0 %v6026_v1 }
  0x65   :  { %5518 = vmatprep.subr.bf16.mxu1 %v6026_v1 }
  0x67   :  { %4959 = vmatmul.mubr.f32.vlgmr.msra.gmra.mrb[2].mxu1 %v6028_v2  ;;  %5517 = vmatpush3.bf16.msra.mxu0 %v6178_v15 }
  0x68   :  { %5520 = vmatpush3.bf16.msra.mxu1 %v6174_v14  ;;  %5530 = vmatprep.subr.bf16.mxu0 %v6026_v1 }
  0x69   :  { %5521 = vmatprep.subr.bf16.mxu1 %v6026_v1  ;;  %4980 = vmatprep.mubr.msk.f32.mxu1 %vm6027_vm0, %v6028_v2 }
  0x6c   :  { %5523 = vmatpush3.bf16.msra.mxu1 %v6195_v20 }
  0x6d   :  { %5524 = vmatprep.subr.bf16.mxu1 %v6026_v1 }
 0x125   :  { %v169_v38 = vpop.f32.mrb[0].mxu0 }
 0x126   :  { %v170_v39 = vadd.f32 %v4564_v37, %v169_v38  ;;  %v4905_v40 = vpop.f32.mrb[1].mxu0 }
 0x128   :  { %173 = vst [vmem:[#allocation2] sm:$0xff] %v170_v39 }
 0x12a   :  { %v282_v41 = vpop.f32.mrb[0].mxu1 }
 0x12b   :  { %v4916_v42 = vpop.f32.mrb[1].mxu1 }
 0x12f   :  { %v211_v44 = vld [vmem:[#allocation2] sm:$0x1]  ;;  %v614_v28 = vld [vmem:[#allocation2 + $0x1] sm:$0x1] }
 0x130   :  { %v286_v48 = vadd.f32 %v282_v41, %v211_v44 }
 0x135   :  { %v423_v47 = vpop.f32.mrb[2].mxu0 }
 0x136   :  { %v568_v49 = vrot.slane %v423_v47, 7  ;;  %v4938_v50 = vpop.f32.mrb[3].mxu0 }
 0x138   :  { %v573_v52 = vsel %vm205_vm2, %v286_v48, %v568_v49 }
 0x13a   :  { %v563_v54 = vpop.f32.mrb[2].mxu1 }
 0x13b   :  { %v571_v56 = vrot.slane %v563_v54, 6  ;;  %v4960_v57 = vpop.f32.mrb[3].mxu1 }
 0x13d   :  { %v574_v58 = vsel %vm207_vm3, %v573_v52, %v571_v56 }
 0x13e   :  { %v575_v59 = vadd.f32 %v574_v58, %v6260_v55 }
 0x140   :  { %5842 = vtanh.f32 %v575_v59  ;;  %v4574_v61 = vmul.f32 -1.442695, %v575_v59 }
 0x142   :  { %5844 = vpow2.f32 %v4574_v61 }
 0x14a   :  { %v5843_v60 = vpop.eup %5842 }
 0x14b   :  { %585 = vrot.lane.b32.xlu0 %v5843_v60, %s6029_s3 }
 0x14c   :  { %v5845_v62 = vpop.eup %5844 }
 0x14d   :  { %v579_v63 = vadd.f32 1.0, %v5845_v62 }
 0x14f   :  { %5846 = vrcp.f32 %v579_v63 }
 0x159   :  { %v5847_v0 = vpop.eup %5846 }
 0x15a   :  { %v583_v5 = vmul.f32 0.0, %v5847_v0 }
 0x1bd   :  { %v586_v3 = vpop.permute.xlu0 %585 }
 0x1be   :  { %v588_v4 = vmul.f32 %v5847_v0, %v586_v3  ;;  %v1023_v3 = vld [vmem:[#allocation2 + $0x2] sm:$0x1] }
 0x1c0   :  { %590 = vrot.lane.b32.xlu0 %v588_v4, %s6030_s4 }
 0x232   :  { %v591_v6 = vpop.permute.xlu0 %590 }
 0x233   :  { %v6266_v7 = vadd.f32 %v591_v6, %v583_v5 }
 0x235   :  { %5848 = vtanh.f32 %v6266_v7  ;;  %v6327_v49 = vsel %vm600_vm4, %v6266_v7, 0.0 }
 0x23f   :  { %v5849_v8 = vpop.eup %5848 }
 0x240   :  { %596 = vrot.lane.b32.xlu1 %v5849_v8, %s6029_s3 }
 0x2b2   :  { %v597_v12 = vpop.permute.xlu1 %596 }
 0x2b3   :  { %v599_v13 = vmul.f32 %v5847_v0, %v597_v12 }
 0x2b5   :  { %v6275_v16 = vsel %vm600_vm4, %v599_v13, 0.0 }
 0x2b6   :  { %609 = vrot.lane.b32.xlu1 %v6275_v16, %s6030_s4  ;;  %v688_v17 = vrot.slane %v6275_v16, 1  ;;  %v833_v18 = vrot.slane %v6275_v16, 2 }
 0x2b8   :  { %689 = vrot.lane.b32.xlu0 %v688_v17, %s6030_s4 }
 0x2ba   :  { %834 = vrot.lane.b32.xlu1 %v833_v18, %s6030_s4 }
 0x328   :  { %v610_v19 = vpop.permute.xlu1 %609 }
 0x329   :  { %613 = vst.msk [vmem:[#allocation3 - $0x2] sm:$0x4] %vm612_vm5, %v610_v19  ;;  %4970 = vmatmul.mubr.msk.f32.vlgmr.msra.gmra.mrb[4].mxu0 %vm212_vm6, %v610_v19 }
 0x32a   :  { %5532 = vmatpush3.bf16.msra.mxu0 %v6201_v21  ;;  %v690_v22 = vpop.permute.xlu0 %689  ;;  %5002 = vmatprep.mubr.msk.f32.mxu0 %vm6027_vm0, %v6028_v2 }
 0x32b   :  { %4981 = vmatmul.mubr.msk.f32.vlgmr.msra.gmra.mrb[4].mxu1 %vm212_vm6, %v690_v22  ;;  %5533 = vmatprep.subr.bf16.mxu0 %v6026_v1 }
 0x32c   :  { %5526 = vmatpush3.bf16.msra.mxu1 %v6212_v26  ;;  %4991 = vmatprep.mubr.msk.f32.mxu1 %vm6027_vm0, %v6028_v2  ;;  %v835_v23 = vpop.permute.xlu1 %834 }
 0x32d   :  { %5527 = vmatprep.subr.bf16.mxu1 %v6026_v1 }
 0x32e   :  { %5535 = vmatpush3.bf16.msra.mxu0 %v6216_v27 }
 0x32f   :  { %5536 = vmatprep.subr.bf16.mxu0 %v6026_v1 }
 0x330   :  { %5529 = vmatpush3.bf16.msra.mxu1 %v6223_v32 }
 0x331   :  { %5003 = vmatmul.mubr.msk.f32.vlgmr.msra.gmra.mrb[6].mxu0 %vm212_vm6, %v835_v23  ;;  %5542 = vmatprep.subr.bf16.mxu1 %v6026_v1 }
 0x332   :  { %5538 = vmatpush3.bf16.msra.mxu0 %v6229_v33  ;;  %5013 = vmatprep.mubr.msk.f32.mxu0 %vm6027_vm0, %v6028_v2 }
 0x333   :  { %4992 = vmatmul.mubr.msk.f32.vlgmr.msra.gmra.mrb[4].mxu1 %vm212_vm6, %v610_v19  ;;  %5539 = vmatprep.subr.bf16.mxu0 %v6026_v1 }
 0x334   :  { %5544 = vmatpush3.bf16.msra.mxu1 %v6163_v9  ;;  %5024 = vmatprep.mubr.msk.f32.mxu1 %vm6027_vm0, %v6028_v2 }
 0x335   :  { %5545 = vmatprep.subr.bf16.mxu1 %v6026_v1 }
 0x336   :  { %5541 = vmatpush3.bf16.msra.mxu0 %v6235_v36 }
 0x337   :  { %5548 = vmatprep.subr.bf16.mxu0 %v6026_v1 }
 0x338   :  { %5547 = vmatpush3.bf16.msra.mxu1 %v6178_v15 }
 0x339   :  { %5014 = vmatmul.mubr.msk.f32.vlgmr.msra.gmra.mrb[6].mxu0 %vm212_vm6, %v690_v22  ;;  %5560 = vmatprep.subr.bf16.mxu1 %v6026_v1 }
 0x33a   :  { %5550 = vmatpush3.bf16.msra.mxu0 %v6174_v14  ;;  %5035 = vmatprep.mubr.msk.f32.mxu0 %vm6027_vm0, %v6028_v2 }
 0x33b   :  { %5551 = vmatprep.subr.bf16.mxu0 %v6026_v1 }
 0x33e   :  { %5553 = vmatpush3.bf16.msra.mxu0 %v6195_v20 }
 0x33f   :  { %5554 = vmatprep.subr.bf16.mxu0 %v6026_v1 }
 0x3fc   :  { %v683_v24 = vpop.f32.mrb[4].mxu0 }
 0x3fd   :  { %v4971_v25 = vpop.f32.mrb[5].mxu0  ;;  %v687_v30 = vadd.f32 %v683_v24, %v614_v28 }
 0x406   :  { %v829_v29 = vpop.f32.mrb[4].mxu1 }
 0x407   :  { %v979_v31 = vrot.slane %v829_v29, 7  ;;  %v4993_v34 = vpop.f32.mrb[5].mxu1 }
 0x409   :  { %v984_v35 = vsel %vm205_vm2, %v687_v30, %v979_v31 }
 0x40c   :  { %v974_v37 = vpop.f32.mrb[6].mxu0 }
 0x40d   :  { %v982_v38 = vrot.slane %v974_v37, 6  ;;  %v5015_v39 = vpop.f32.mrb[7].mxu0 }
 0x40f   :  { %v985_v40 = vsel %vm207_vm3, %v984_v35, %v982_v38 }
 0x410   :  { %v986_v41 = vadd.f32 %v985_v40, %v6260_v55 }
 0x412   :  { %5850 = vtanh.f32 %v986_v41  ;;  %v4580_v43 = vmul.f32 -1.442695, %v986_v41 }
 0x414   :  { %5852 = vpow2.f32 %v4580_v43 }
 0x41c   :  { %v5851_v42 = vpop.eup %5850 }
 0x41d   :  { %996 = vrot.lane.b32.xlu0 %v5851_v42, %s6029_s3 }
 0x41e   :  { %v5853_v44 = vpop.eup %5852 }
 0x41f   :  { %v990_v45 = vadd.f32 1.0, %v5853_v44 }
 0x421   :  { %5854 = vrcp.f32 %v990_v45 }
 0x42b   :  { %v5855_v46 = vpop.eup %5854 }
 0x42c   :  { %v994_v50 = vmul.f32 %v5855_v46, %v6327_v49 }
 0x48f   :  { %v997_v47 = vpop.permute.xlu0 %996 }
 0x490   :  { %v999_v48 = vmul.f32 %v5855_v46, %v997_v47  ;;  %v1432_v47 = vld [vmem:[#allocation2 + $0x3] sm:$0x1] }
 0x492   :  { %1001 = vrot.lane.b32.xlu1 %v999_v48, %s6030_s4 }
 0x504   :  { %v1002_v51 = vpop.permute.xlu1 %1001 }
 0x505   :  { %v6330_v52 = vadd.f32 %v1002_v51, %v994_v50 }
 0x507   :  { %5856 = vtanh.f32 %v6330_v52  ;;  %v6391_v29 = vsel %vm1011_vm7, %v6330_v52, %v6327_v49 }
 0x511   :  { %v5857_v53 = vpop.eup %5856 }
 0x512   :  { %1007 = vrot.lane.b32.xlu0 %v5857_v53, %s6029_s3 }
 0x584   :  { %v1008_v54 = vpop.permute.xlu0 %1007 }
 0x585   :  { %v1010_v56 = vmul.f32 %v5855_v46, %v1008_v54 }
 0x587   :  { %v6338_v57 = vsel %vm1011_vm7, %v1010_v56, %v6275_v16 }
 0x588   :  { %1019 = vrot.lane.b32.xlu1 %v6338_v57, %s6030_s4  ;;  %v1097_v58 = vrot.slane %v6338_v57, 1  ;;  %v1242_v59 = vrot.slane %v6338_v57, 2 }
 0x58a   :  { %1098 = vrot.lane.b32.xlu0 %v1097_v58, %s6030_s4 }
 0x58c   :  { %1243 = vrot.lane.b32.xlu1 %v1242_v59, %s6030_s4 }
 0x5fa   :  { %v1020_v60 = vpop.permute.xlu1 %1019 }
 0x5fb   :  { %1022 = vst.msk [vmem:[#allocation3 - $0x2] sm:$0x4] %vm612_vm5, %v1020_v60  ;;  %5025 = vmatmul.mubr.msk.f32.vlgmr.msra.gmra.mrb[6].mxu1 %vm212_vm6, %v1020_v60 }
 0x5fc   :  { %5562 = vmatpush3.bf16.msra.mxu1 %v6201_v21  ;;  %v1099_v61 = vpop.permute.xlu0 %1098  ;;  %5057 = vmatprep.mubr.msk.f32.mxu1 %vm6027_vm0, %v6028_v2 }
 0x5fd   :  { %5036 = vmatmul.mubr.msk.f32.vlgmr.msra.gmra.mrb[8].mxu0 %vm212_vm6, %v1099_v61  ;;  %5563 = vmatprep.subr.bf16.mxu1 %v6026_v1 }
 0x5fe   :  { %5556 = vmatpush3.bf16.msra.mxu0 %v6212_v26  ;;  %5046 = vmatprep.mubr.msk.f32.mxu0 %vm6027_vm0, %v6028_v2  ;;  %v1244_v62 = vpop.permute.xlu1 %1243 }
 0x5ff   :  { %5557 = vmatprep.subr.bf16.mxu0 %v6026_v1 }
 0x600   :  { %5565 = vmatpush3.bf16.msra.mxu1 %v6216_v27 }
 0x601   :  { %5566 = vmatprep.subr.bf16.mxu1 %v6026_v1 }
 0x602   :  { %5559 = vmatpush3.bf16.msra.mxu0 %v6223_v32 }
 0x603   :  { %5058 = vmatmul.mubr.msk.f32.vlgmr.msra.gmra.mrb[8].mxu1 %vm212_vm6, %v1244_v62  ;;  %5572 = vmatprep.subr.bf16.mxu0 %v6026_v1 }
 0x604   :  { %5568 = vmatpush3.bf16.msra.mxu1 %v6229_v33  ;;  %5068 = vmatprep.mubr.msk.f32.mxu1 %vm6027_vm0, %v6028_v2 }
 0x605   :  { %5047 = vmatmul.mubr.msk.f32.vlgmr.msra.gmra.mrb[8].mxu0 %vm212_vm6, %v1020_v60  ;;  %5569 = vmatprep.subr.bf16.mxu1 %v6026_v1 }
 0x606   :  { %5574 = vmatpush3.bf16.msra.mxu0 %v6163_v9  ;;  %5079 = vmatprep.mubr.msk.f32.mxu0 %vm6027_vm0, %v6028_v2 }
 0x607   :  { %5575 = vmatprep.subr.bf16.mxu0 %v6026_v1 }
 0x608   :  { %5571 = vmatpush3.bf16.msra.mxu1 %v6235_v36 }
 0x609   :  { %5578 = vmatprep.subr.bf16.mxu1 %v6026_v1 }
 0x60a   :  { %5577 = vmatpush3.bf16.msra.mxu0 %v6178_v15 }
 0x60b   :  { %5069 = vmatmul.mubr.msk.f32.vlgmr.msra.gmra.mrb[8].mxu1 %vm212_vm6, %v1099_v61  ;;  %5590 = vmatprep.subr.bf16.mxu0 %v6026_v1 }
 0x60c   :  { %5580 = vmatpush3.bf16.msra.mxu1 %v6174_v14  ;;  %5090 = vmatprep.mubr.msk.f32.mxu1 %vm6027_vm0, %v6028_v2 }
 0x60d   :  { %5581 = vmatprep.subr.bf16.mxu1 %v6026_v1 }
 0x610   :  { %5583 = vmatpush3.bf16.msra.mxu1 %v6195_v20 }
 0x611   :  { %5584 = vmatprep.subr.bf16.mxu1 %v6026_v1 }
 0x6ce   :  { %v1092_v63 = vpop.f32.mrb[6].mxu1 }
 0x6cf   :  { %v5026_v0 = vpop.f32.mrb[7].mxu1  ;;  %v1096_v5 = vadd.f32 %v1092_v63, %v1023_v3 }
 0x6d8   :  { %v1238_v4 = vpop.f32.mrb[8].mxu0 }
 0x6d9   :  { %v1388_v6 = vrot.slane %v1238_v4, 7  ;;  %v5048_v7 = vpop.f32.mrb[9].mxu0 }
 0x6db   :  { %v1393_v8 = vsel %vm205_vm2, %v1096_v5, %v1388_v6 }
 0x6de   :  { %v1383_v10 = vpop.f32.mrb[8].mxu1 }
 0x6df   :  { %v1391_v12 = vrot.slane %v1383_v10, 6  ;;  %v5070_v13 = vpop.f32.mrb[9].mxu1 }
 0x6e1   :  { %v1394_v16 = vsel %vm207_vm3, %v1393_v8, %v1391_v12 }
 0x6e2   :  { %v1395_v17 = vadd.f32 %v1394_v16, %v6260_v55 }
 0x6e4   :  { %5858 = vtanh.f32 %v1395_v17  ;;  %v4586_v19 = vmul.f32 -1.442695, %v1395_v17 }
 0x6e6   :  { %5860 = vpow2.f32 %v4586_v19 }
 0x6ee   :  { %v5859_v18 = vpop.eup %5858 }
 0x6ef   :  { %1405 = vrot.lane.b32.xlu0 %v5859_v18, %s6029_s3 }
 0x6f0   :  { %v5861_v22 = vpop.eup %5860 }
 0x6f1   :  { %v1399_v23 = vadd.f32 1.0, %v5861_v22 }
 0x6f3   :  { %5862 = vrcp.f32 %v1399_v23 }
 0x6fd   :  { %v5863_v24 = vpop.eup %5862 }
 0x6fe   :  { %v1403_v30 = vmul.f32 %v5863_v24, %v6391_v29 }
 0x761   :  { %v1406_v25 = vpop.permute.xlu0 %1405 }
 0x762   :  { %v1408_v28 = vmul.f32 %v5863_v24, %v1406_v25  ;;  %v1841_v25 = vld [vmem:[#allocation2 + $0x4] sm:$0x1] }
 0x764   :  { %1410 = vrot.lane.b32.xlu1 %v1408_v28, %s6030_s4 }
 0x7d6   :  { %v1411_v31 = vpop.permute.xlu1 %1410 }
 0x7d7   :  { %v6394_v34 = vadd.f32 %v1411_v31, %v1403_v30 }
 0x7d9   :  { %5864 = vtanh.f32 %v6394_v34  ;;  %v6455_v4 = vsel %vm1420_vm8, %v6394_v34, %v6391_v29 }
 0x7e3   :  { %v5865_v35 = vpop.eup %5864 }
 0x7e4   :  { %1416 = vrot.lane.b32.xlu0 %v5865_v35, %s6029_s3 }
 0x856   :  { %v1417_v37 = vpop.permute.xlu0 %1416 }
 0x857   :  { %v1419_v38 = vmul.f32 %v5863_v24, %v1417_v37 }
 0x859   :  { %v6402_v39 = vsel %vm1420_vm8, %v1419_v38, %v6338_v57 }
 0x85a   :  { %1428 = vrot.lane.b32.xlu1 %v6402_v39, %s6030_s4  ;;  %v1506_v40 = vrot.slane %v6402_v39, 1  ;;  %v1651_v41 = vrot.slane %v6402_v39, 2 }
 0x85c   :  { %1507 = vrot.lane.b32.xlu0 %v1506_v40, %s6030_s4 }
 0x85e   :  { %1652 = vrot.lane.b32.xlu1 %v1651_v41, %s6030_s4 }
 0x8cc   :  { %v1429_v42 = vpop.permute.xlu1 %1428 }
 0x8cd   :  { %1431 = vst.msk [vmem:[#allocation3 - $0x2] sm:$0x4] %vm612_vm5, %v1429_v42  ;;  %5080 = vmatmul.mubr.msk.f32.vlgmr.msra.gmra.mrb[10].mxu0 %vm212_vm6, %v1429_v42 }
 0x8ce   :  { %5592 = vmatpush3.bf16.msra.mxu0 %v6201_v21  ;;  %v1508_v43 = vpop.permute.xlu0 %1507  ;;  %5112 = vmatprep.mubr.msk.f32.mxu0 %vm6027_vm0, %v6028_v2 }
 0x8cf   :  { %5091 = vmatmul.mubr.msk.f32.vlgmr.msra.gmra.mrb[10].mxu1 %vm212_vm6, %v1508_v43  ;;  %5593 = vmatprep.subr.bf16.mxu0 %v6026_v1 }
 0x8d0   :  { %5586 = vmatpush3.bf16.msra.mxu1 %v6212_v26  ;;  %5101 = vmatprep.mubr.msk.f32.mxu1 %vm6027_vm0, %v6028_v2  ;;  %v1653_v44 = vpop.permute.xlu1 %1652 }
 0x8d1   :  { %5587 = vmatprep.subr.bf16.mxu1 %v6026_v1 }
 0x8d2   :  { %5595 = vmatpush3.bf16.msra.mxu0 %v6216_v27 }
 0x8d3   :  { %5596 = vmatprep.subr.bf16.mxu0 %v6026_v1 }
 0x8d4   :  { %5589 = vmatpush3.bf16.msra.mxu1 %v6223_v32 }
 0x8d5   :  { %5113 = vmatmul.mubr.msk.f32.vlgmr.msra.gmra.mrb[12].mxu0 %vm212_vm6, %v1653_v44  ;;  %5602 = vmatprep.subr.bf16.mxu1 %v6026_v1 }
 0x8d6   :  { %5598 = vmatpush3.bf16.msra.mxu0 %v6229_v33  ;;  %5123 = vmatprep.mubr.msk.f32.mxu0 %vm6027_vm0, %v6028_v2 }
 0x8d7   :  { %5102 = vmatmul.mubr.msk.f32.vlgmr.msra.gmra.mrb[10].mxu1 %vm212_vm6, %v1429_v42  ;;  %5599 = vmatprep.subr.bf16.mxu0 %v6026_v1 }
 0x8d8   :  { %5604 = vmatpush3.bf16.msra.mxu1 %v6163_v9  ;;  %5134 = vmatprep.mubr.msk.f32.mxu1 %vm6027_vm0, %v6028_v2 }
 0x8d9   :  { %5605 = vmatprep.subr.bf16.mxu1 %v6026_v1 }
 0x8da   :  { %5601 = vmatpush3.bf16.msra.mxu0 %v6235_v36 }
 0x8db   :  { %5608 = vmatprep.subr.bf16.mxu0 %v6026_v1 }
 0x8dc   :  { %5607 = vmatpush3.bf16.msra.mxu1 %v6178_v15 }
 0x8dd   :  { %5124 = vmatmul.mubr.msk.f32.vlgmr.msra.gmra.mrb[12].mxu0 %vm212_vm6, %v1508_v43  ;;  %5620 = vmatprep.subr.bf16.mxu1 %v6026_v1 }
 0x8de   :  { %5610 = vmatpush3.bf16.msra.mxu0 %v6174_v14  ;;  %5145 = vmatprep.mubr.msk.f32.mxu0 %vm6027_vm0, %v6028_v2 }
 0x8df   :  { %5611 = vmatprep.subr.bf16.mxu0 %v6026_v1 }
 0x8e2   :  { %5613 = vmatpush3.bf16.msra.mxu0 %v6195_v20 }
 0x8e3   :  { %5614 = vmatprep.subr.bf16.mxu0 %v6026_v1 }
 0x9a0   :  { %v1501_v45 = vpop.f32.mrb[10].mxu0 }
 0x9a1   :  { %v5081_v46 = vpop.f32.mrb[11].mxu0  ;;  %v1505_v49 = vadd.f32 %v1501_v45, %v1432_v47 }
 0x9aa   :  { %v1647_v48 = vpop.f32.mrb[10].mxu1 }
 0x9ab   :  { %v1797_v50 = vrot.slane %v1647_v48, 7  ;;  %v5103_v51 = vpop.f32.mrb[11].mxu1 }
 0x9ad   :  { %v1802_v52 = vsel %vm205_vm2, %v1505_v49, %v1797_v50 }
 0x9b0   :  { %v1792_v53 = vpop.f32.mrb[12].mxu0 }
 0x9b1   :  { %v1800_v54 = vrot.slane %v1792_v53, 6  ;;  %v5125_v56 = vpop.f32.mrb[13].mxu0 }
 0x9b3   :  { %v1803_v57 = vsel %vm207_vm3, %v1802_v52, %v1800_v54 }
 0x9b4   :  { %v1804_v58 = vadd.f32 %v1803_v57, %v6260_v55 }
 0x9b6   :  { %5866 = vtanh.f32 %v1804_v58  ;;  %v4592_v60 = vmul.f32 -1.442695, %v1804_v58 }
 0x9b8   :  { %5868 = vpow2.f32 %v4592_v60 }
 0x9c0   :  { %v5867_v59 = vpop.eup %5866 }
 0x9c1   :  { %1814 = vrot.lane.b32.xlu0 %v5867_v59, %s6029_s3 }
 0x9c2   :  { %v5869_v61 = vpop.eup %5868 }
 0x9c3   :  { %v1808_v62 = vadd.f32 1.0, %v5869_v61 }
 0x9c5   :  { %5870 = vrcp.f32 %v1808_v62 }
 0x9cf   :  { %v5871_v63 = vpop.eup %5870 }
 0x9d0   :  { %v1812_v5 = vmul.f32 %v5871_v63, %v6455_v4 }
 0xa33   :  { %v1815_v0 = vpop.permute.xlu0 %1814 }
 0xa34   :  { %v1817_v3 = vmul.f32 %v5871_v63, %v1815_v0  ;;  %v2250_v0 = vld [vmem:[#allocation2 + $0x5] sm:$0x1] }
 0xa36   :  { %1819 = vrot.lane.b32.xlu1 %v1817_v3, %s6030_s4 }
 0xaa8   :  { %v1820_v6 = vpop.permute.xlu1 %1819 }
 0xaa9   :  { %v6458_v7 = vadd.f32 %v1820_v6, %v1812_v5 }
 0xaab   :  { %5872 = vtanh.f32 %v6458_v7  ;;  %v6519_v48 = vsel %vm1829_vm9, %v6458_v7, %v6455_v4 }
 0xab5   :  { %v5873_v8 = vpop.eup %5872 }
 0xab6   :  { %1825 = vrot.lane.b32.xlu0 %v5873_v8, %s6029_s3 }
 0xb28   :  { %v1826_v10 = vpop.permute.xlu0 %1825 }
 0xb29   :  { %v1828_v12 = vmul.f32 %v5871_v63, %v1826_v10 }
 0xb2b   :  { %v6466_v13 = vsel %vm1829_vm9, %v1828_v12, %v6402_v39 }
 0xb2c   :  { %1837 = vrot.lane.b32.xlu1 %v6466_v13, %s6030_s4  ;;  %v1915_v16 = vrot.slane %v6466_v13, 1  ;;  %v2060_v17 = vrot.slane %v6466_v13, 2 }
 0xb2e   :  { %1916 = vrot.lane.b32.xlu0 %v1915_v16, %s6030_s4 }
 0xb30   :  { %2061 = vrot.lane.b32.xlu1 %v2060_v17, %s6030_s4 }
 0xb9e   :  { %v1838_v18 = vpop.permute.xlu1 %1837 }
 0xb9f   :  { %1840 = vst.msk [vmem:[#allocation3 - $0x1] sm:$0x4] %vm612_vm5, %v1838_v18  ;;  %5135 = vmatmul.mubr.msk.f32.vlgmr.msra.gmra.mrb[12].mxu1 %vm212_vm6, %v1838_v18 }
 0xba0   :  { %5622 = vmatpush3.bf16.msra.mxu1 %v6201_v21  ;;  %v1917_v19 = vpop.permute.xlu0 %1916  ;;  %5167 = vmatprep.mubr.msk.f32.mxu1 %vm6027_vm0, %v6028_v2 }
 0xba1   :  { %5146 = vmatmul.mubr.msk.f32.vlgmr.msra.gmra.mrb[14].mxu0 %vm212_vm6, %v1917_v19  ;;  %5623 = vmatprep.subr.bf16.mxu1 %v6026_v1 }
 0xba2   :  { %5616 = vmatpush3.bf16.msra.mxu0 %v6212_v26  ;;  %5156 = vmatprep.mubr.msk.f32.mxu0 %vm6027_vm0, %v6028_v2  ;;  %v2062_v22 = vpop.permute.xlu1 %2061 }
 0xba3   :  { %5617 = vmatprep.subr.bf16.mxu0 %v6026_v1 }
 0xba4   :  { %5625 = vmatpush3.bf16.msra.mxu1 %v6216_v27 }
 0xba5   :  { %5626 = vmatprep.subr.bf16.mxu1 %v6026_v1 }
 0xba6   :  { %5619 = vmatpush3.bf16.msra.mxu0 %v6223_v32 }
 0xba7   :  { %5168 = vmatmul.mubr.msk.f32.vlgmr.msra.gmra.mrb[14].mxu1 %vm212_vm6, %v2062_v22  ;;  %5632 = vmatprep.subr.bf16.mxu0 %v6026_v1 }
 0xba8   :  { %5628 = vmatpush3.bf16.msra.mxu1 %v6229_v33  ;;  %5178 = vmatprep.mubr.msk.f32.mxu1 %vm6027_vm0, %v6028_v2 }
 0xba9   :  { %5157 = vmatmul.mubr.msk.f32.vlgmr.msra.gmra.mrb[14].mxu0 %vm212_vm6, %v1838_v18  ;;  %5629 = vmatprep.subr.bf16.mxu1 %v6026_v1 }
 0xbaa   :  { %5634 = vmatpush3.bf16.msra.mxu0 %v6163_v9  ;;  %5189 = vmatprep.mubr.msk.f32.mxu0 %vm6027_vm0, %v6028_v2 }
 0xbab   :  { %5635 = vmatprep.subr.bf16.mxu0 %v6026_v1 }
 0xbac   :  { %5631 = vmatpush3.bf16.msra.mxu1 %v6235_v36 }
 0xbad   :  { %5638 = vmatprep.subr.bf16.mxu1 %v6026_v1 }
 0xbae   :  { %5637 = vmatpush3.bf16.msra.mxu0 %v6178_v15 }
 0xbaf   :  { %5179 = vmatmul.mubr.msk.f32.vlgmr.msra.gmra.mrb[14].mxu1 %vm212_vm6, %v1917_v19  ;;  %5650 = vmatprep.subr.bf16.mxu0 %v6026_v1 }
 0xbb0   :  { %5640 = vmatpush3.bf16.msra.mxu1 %v6174_v14  ;;  %5200 = vmatprep.mubr.msk.f32.mxu1 %vm6027_vm0, %v6028_v2 }
 0xbb1   :  { %5641 = vmatprep.subr.bf16.mxu1 %v6026_v1 }
 0xbb4   :  { %5643 = vmatpush3.bf16.msra.mxu1 %v6195_v20 }
 0xbb5   :  { %5644 = vmatprep.subr.bf16.mxu1 %v6026_v1 }
 0xc72   :  { %v1910_v23 = vpop.f32.mrb[12].mxu1 }
 0xc73   :  { %v5136_v24 = vpop.f32.mrb[13].mxu1  ;;  %v1914_v29 = vadd.f32 %v1910_v23, %v1841_v25 }
 0xc7c   :  { %v2056_v28 = vpop.f32.mrb[14].mxu0 }
 0xc7d   :  { %v2206_v30 = vrot.slane %v2056_v28, 7  ;;  %v5158_v31 = vpop.f32.mrb[15].mxu0 }
 0xc7f   :  { %v2211_v34 = vsel %vm205_vm2, %v1914_v29, %v2206_v30 }
 0xc82   :  { %v2201_v35 = vpop.f32.mrb[14].mxu1 }
 0xc83   :  { %v2209_v37 = vrot.slane %v2201_v35, 6  ;;  %v5180_v38 = vpop.f32.mrb[15].mxu1 }
 0xc85   :  { %v2212_v39 = vsel %vm207_vm3, %v2211_v34, %v2209_v37 }
 0xc86   :  { %v2213_v40 = vadd.f32 %v2212_v39, %v6260_v55 }
 0xc88   :  { %5874 = vtanh.f32 %v2213_v40  ;;  %v4598_v42 = vmul.f32 -1.442695, %v2213_v40 }
 0xc8a   :  { %5876 = vpow2.f32 %v4598_v42 }
 0xc92   :  { %v5875_v41 = vpop.eup %5874 }
 0xc93   :  { %2223 = vrot.lane.b32.xlu0 %v5875_v41, %s6029_s3 }
 0xc94   :  { %v5877_v43 = vpop.eup %5876 }
 0xc95   :  { %v2217_v44 = vadd.f32 1.0, %v5877_v43 }
 0xc97   :  { %5878 = vrcp.f32 %v2217_v44 }
 0xca1   :  { %v5879_v45 = vpop.eup %5878 }
 0xca2   :  { %v2221_v49 = vmul.f32 %v5879_v45, %v6519_v48 }
 0xd05   :  { %v2224_v46 = vpop.permute.xlu0 %2223 }
 0xd06   :  { %v2226_v47 = vmul.f32 %v5879_v45, %v2224_v46  ;;  %v2659_v46 = vld [vmem:[#allocation2 + $0x6] sm:$0x1] }
 0xd08   :  { %2228 = vrot.lane.b32.xlu1 %v2226_v47, %s6030_s4 }
 0xd7a   :  { %v2229_v50 = vpop.permute.xlu1 %2228 }
 0xd7b   :  { %v6522_v51 = vadd.f32 %v2229_v50, %v2221_v49 }
 0xd7d   :  { %5880 = vtanh.f32 %v6522_v51  ;;  %v6583_v28 = vsel %vm2238_vm10, %v6522_v51, %v6519_v48 }
 0xd87   :  { %v5881_v52 = vpop.eup %5880 }
 0xd88   :  { %2234 = vrot.lane.b32.xlu0 %v5881_v52, %s6029_s3 }
 0xdfa   :  { %v2235_v53 = vpop.permute.xlu0 %2234 }
 0xdfb   :  { %v2237_v54 = vmul.f32 %v5879_v45, %v2235_v53 }
 0xdfd   :  { %v6530_v56 = vsel %vm2238_vm10, %v2237_v54, %v6466_v13 }
 0xdfe   :  { %2246 = vrot.lane.b32.xlu1 %v6530_v56, %s6030_s4  ;;  %v2324_v57 = vrot.slane %v6530_v56, 1  ;;  %v2469_v58 = vrot.slane %v6530_v56, 2 }
 0xe00   :  { %2325 = vrot.lane.b32.xlu0 %v2324_v57, %s6030_s4 }
 0xe02   :  { %2470 = vrot.lane.b32.xlu1 %v2469_v58, %s6030_s4 }
 0xe70   :  { %v2247_v59 = vpop.permute.xlu1 %2246 }
 0xe71   :  { %2249 = vst.msk [vmem:[#allocation3] sm:$0x4] %vm612_vm5, %v2247_v59  ;;  %5190 = vmatmul.mubr.msk.f32.vlgmr.msra.gmra.mrb[16].mxu0 %vm212_vm6, %v2247_v59 }
 0xe72   :  { %5652 = vmatpush3.bf16.msra.mxu0 %v6201_v21  ;;  %v2326_v60 = vpop.permute.xlu0 %2325  ;;  %5222 = vmatprep.mubr.msk.f32.mxu0 %vm6027_vm0, %v6028_v2 }
 0xe73   :  { %5201 = vmatmul.mubr.msk.f32.vlgmr.msra.gmra.mrb[16].mxu1 %vm212_vm6, %v2326_v60  ;;  %5653 = vmatprep.subr.bf16.mxu0 %v6026_v1 }
 0xe74   :  { %5646 = vmatpush3.bf16.msra.mxu1 %v6212_v26  ;;  %5211 = vmatprep.mubr.msk.f32.mxu1 %vm6027_vm0, %v6028_v2  ;;  %v2471_v61 = vpop.permute.xlu1 %2470 }
 0xe75   :  { %5647 = vmatprep.subr.bf16.mxu1 %v6026_v1 }
 0xe76   :  { %5655 = vmatpush3.bf16.msra.mxu0 %v6216_v27 }
 0xe77   :  { %5656 = vmatprep.subr.bf16.mxu0 %v6026_v1 }
 0xe78   :  { %5649 = vmatpush3.bf16.msra.mxu1 %v6223_v32 }
 0xe79   :  { %5223 = vmatmul.mubr.msk.f32.vlgmr.msra.gmra.mrb[18].mxu0 %vm212_vm6, %v2471_v61  ;;  %5662 = vmatprep.subr.bf16.mxu1 %v6026_v1 }
 0xe7a   :  { %5658 = vmatpush3.bf16.msra.mxu0 %v6229_v33  ;;  %5233 = vmatprep.mubr.msk.f32.mxu0 %vm6027_vm0, %v6028_v2 }
 0xe7b   :  { %5212 = vmatmul.mubr.msk.f32.vlgmr.msra.gmra.mrb[16].mxu1 %vm212_vm6, %v2247_v59  ;;  %5659 = vmatprep.subr.bf16.mxu0 %v6026_v1 }
 0xe7c   :  { %5664 = vmatpush3.bf16.msra.mxu1 %v6163_v9  ;;  %5244 = vmatprep.mubr.msk.f32.mxu1 %vm6027_vm0, %v6028_v2 }
 0xe7d   :  { %5665 = vmatprep.subr.bf16.mxu1 %v6026_v1 }
 0xe7e   :  { %5661 = vmatpush3.bf16.msra.mxu0 %v6235_v36 }
 0xe7f   :  { %5668 = vmatprep.subr.bf16.mxu0 %v6026_v1 }
 0xe80   :  { %5667 = vmatpush3.bf16.msra.mxu1 %v6178_v15 }
 0xe81   :  { %5234 = vmatmul.mubr.msk.f32.vlgmr.msra.gmra.mrb[18].mxu0 %vm212_vm6, %v2326_v60  ;;  %5680 = vmatprep.subr.bf16.mxu1 %v6026_v1 }
 0xe82   :  { %5670 = vmatpush3.bf16.msra.mxu0 %v6174_v14  ;;  %5255 = vmatprep.mubr.msk.f32.mxu0 %vm6027_vm0, %v6028_v2 }
 0xe83   :  { %5671 = vmatprep.subr.bf16.mxu0 %v6026_v1 }
 0xe86   :  { %5673 = vmatpush3.bf16.msra.mxu0 %v6195_v20 }
 0xe87   :  { %5674 = vmatprep.subr.bf16.mxu0 %v6026_v1 }
 0xf44   :  { %v2319_v62 = vpop.f32.mrb[16].mxu0 }
 0xf45   :  { %v5191_v63 = vpop.f32.mrb[17].mxu0  ;;  %v2323_v4 = vadd.f32 %v2319_v62, %v2250_v0 }
 0xf4e   :  { %v2465_v3 = vpop.f32.mrb[16].mxu1 }
 0xf4f   :  { %v2615_v5 = vrot.slane %v2465_v3, 7  ;;  %v5213_v6 = vpop.f32.mrb[17].mxu1 }
 0xf51   :  { %v2620_v7 = vsel %vm205_vm2, %v2323_v4, %v2615_v5 }
 0xf54   :  { %v2610_v8 = vpop.f32.mrb[18].mxu0 }
 0xf55   :  { %v2618_v10 = vrot.slane %v2610_v8, 6  ;;  %v5235_v12 = vpop.f32.mrb[19].mxu0 }
 0xf57   :  { %v2621_v13 = vsel %vm207_vm3, %v2620_v7, %v2618_v10 }
 0xf58   :  { %v2622_v16 = vadd.f32 %v2621_v13, %v6260_v55 }
 0xf5a   :  { %5882 = vtanh.f32 %v2622_v16  ;;  %v4604_v18 = vmul.f32 -1.442695, %v2622_v16 }
 0xf5c   :  { %5884 = vpow2.f32 %v4604_v18 }
 0xf64   :  { %v5883_v17 = vpop.eup %5882 }
 0xf65   :  { %2632 = vrot.lane.b32.xlu0 %v5883_v17, %s6029_s3 }
 0xf66   :  { %v5885_v19 = vpop.eup %5884 }
 0xf67   :  { %v2626_v22 = vadd.f32 1.0, %v5885_v19 }
 0xf69   :  { %5886 = vrcp.f32 %v2626_v22 }
 0xf73   :  { %v5887_v23 = vpop.eup %5886 }
 0xf74   :  { %v2630_v29 = vmul.f32 %v5887_v23, %v6583_v28 }
 0xfd7   :  { %v2633_v24 = vpop.permute.xlu0 %2632 }
 0xfd8   :  { %v2635_v25 = vmul.f32 %v5887_v23, %v2633_v24  ;;  %v3068_v24 = vld [vmem:[#allocation2 + $0x7] sm:$0x1] }
 0xfda   :  { %2637 = vrot.lane.b32.xlu1 %v2635_v25, %s6030_s4 }
0x104c   :  { %v2638_v30 = vpop.permute.xlu1 %2637 }
0x104d   :  { %v6586_v31 = vadd.f32 %v2638_v30, %v2630_v29 }
0x104f   :  { %5888 = vtanh.f32 %v6586_v31  ;;  %v6647_v3 = vsel %vm2647_vm11, %v6586_v31, %v6583_v28 }
0x1059   :  { %v5889_v34 = vpop.eup %5888 }
0x105a   :  { %2643 = vrot.lane.b32.xlu0 %v5889_v34, %s6029_s3 }
0x10cc   :  { %v2644_v35 = vpop.permute.xlu0 %2643 }
0x10cd   :  { %v2646_v37 = vmul.f32 %v5887_v23, %v2644_v35 }
0x10cf   :  { %v6594_v38 = vsel %vm2647_vm11, %v2646_v37, %v6530_v56 }
0x10d0   :  { %2655 = vrot.lane.b32.xlu1 %v6594_v38, %s6030_s4  ;;  %v2733_v39 = vrot.slane %v6594_v38, 1  ;;  %v2878_v40 = vrot.slane %v6594_v38, 2 }
0x10d2   :  { %2734 = vrot.lane.b32.xlu0 %v2733_v39, %s6030_s4 }
0x10d4   :  { %2879 = vrot.lane.b32.xlu1 %v2878_v40, %s6030_s4 }
0x1142   :  { %v2656_v41 = vpop.permute.xlu1 %2655 }
0x1143   :  { %2658 = vst.msk [vmem:[#allocation3 + $0x1] sm:$0x4] %vm612_vm5, %v2656_v41  ;;  %5245 = vmatmul.mubr.msk.f32.vlgmr.msra.gmra.mrb[18].mxu1 %vm212_vm6, %v2656_v41 }
0x1144   :  { %5682 = vmatpush3.bf16.msra.mxu1 %v6201_v21  ;;  %v2735_v42 = vpop.permute.xlu0 %2734  ;;  %5277 = vmatprep.mubr.msk.f32.mxu1 %vm6027_vm0, %v6028_v2 }
0x1145   :  { %5256 = vmatmul.mubr.msk.f32.vlgmr.msra.gmra.mrb[20].mxu0 %vm212_vm6, %v2735_v42  ;;  %5683 = vmatprep.subr.bf16.mxu1 %v6026_v1 }
0x1146   :  { %5676 = vmatpush3.bf16.msra.mxu0 %v6212_v26  ;;  %5266 = vmatprep.mubr.msk.f32.mxu0 %vm6027_vm0, %v6028_v2  ;;  %v2880_v43 = vpop.permute.xlu1 %2879 }
0x1147   :  { %5677 = vmatprep.subr.bf16.mxu0 %v6026_v1 }
0x1148   :  { %5685 = vmatpush3.bf16.msra.mxu1 %v6216_v27 }
0x1149   :  { %5686 = vmatprep.subr.bf16.mxu1 %v6026_v1 }
0x114a   :  { %5679 = vmatpush3.bf16.msra.mxu0 %v6223_v32 }
0x114b   :  { %5278 = vmatmul.mubr.msk.f32.vlgmr.msra.gmra.mrb[20].mxu1 %vm212_vm6, %v2880_v43  ;;  %5692 = vmatprep.subr.bf16.mxu0 %v6026_v1 }
0x114c   :  { %5688 = vmatpush3.bf16.msra.mxu1 %v6229_v33  ;;  %5288 = vmatprep.mubr.msk.f32.mxu1 %vm6027_vm0, %v6028_v2 }
0x114d   :  { %5267 = vmatmul.mubr.msk.f32.vlgmr.msra.gmra.mrb[20].mxu0 %vm212_vm6, %v2656_v41  ;;  %5689 = vmatprep.subr.bf16.mxu1 %v6026_v1 }
0x114e   :  { %5694 = vmatpush3.bf16.msra.mxu0 %v6163_v9  ;;  %5299 = vmatprep.mubr.msk.f32.mxu0 %vm6027_vm0, %v6028_v2 }
0x114f   :  { %5695 = vmatprep.subr.bf16.mxu0 %v6026_v1 }
0x1150   :  { %5691 = vmatpush3.bf16.msra.mxu1 %v6235_v36 }
0x1151   :  { %5698 = vmatprep.subr.bf16.mxu1 %v6026_v1 }
0x1152   :  { %5697 = vmatpush3.bf16.msra.mxu0 %v6178_v15 }
0x1153   :  { %5289 = vmatmul.mubr.msk.f32.vlgmr.msra.gmra.mrb[20].mxu1 %vm212_vm6, %v2735_v42  ;;  %5710 = vmatprep.subr.bf16.mxu0 %v6026_v1 }
0x1154   :  { %5700 = vmatpush3.bf16.msra.mxu1 %v6174_v14  ;;  %5310 = vmatprep.mubr.msk.f32.mxu1 %vm6027_vm0, %v6028_v2 }
0x1155   :  { %5701 = vmatprep.subr.bf16.mxu1 %v6026_v1 }
0x1158   :  { %5703 = vmatpush3.bf16.msra.mxu1 %v6195_v20 }
0x1159   :  { %5704 = vmatprep.subr.bf16.mxu1 %v6026_v1 }
0x1216   :  { %v2728_v44 = vpop.f32.mrb[18].mxu1 }
0x1217   :  { %v5246_v45 = vpop.f32.mrb[19].mxu1  ;;  %v2732_v48 = vadd.f32 %v2728_v44, %v2659_v46 }
0x1220   :  { %v2874_v47 = vpop.f32.mrb[20].mxu0 }
0x1221   :  { %v3024_v49 = vrot.slane %v2874_v47, 7  ;;  %v5268_v50 = vpop.f32.mrb[21].mxu0 }
0x1223   :  { %v3029_v51 = vsel %vm205_vm2, %v2732_v48, %v3024_v49 }
0x1226   :  { %v3019_v52 = vpop.f32.mrb[20].mxu1 }
0x1227   :  { %v3027_v53 = vrot.slane %v3019_v52, 6  ;;  %v5290_v54 = vpop.f32.mrb[21].mxu1 }
0x1229   :  { %v3030_v56 = vsel %vm207_vm3, %v3029_v51, %v3027_v53 }
0x122a   :  { %v3031_v57 = vadd.f32 %v3030_v56, %v6260_v55 }
0x122c   :  { %5890 = vtanh.f32 %v3031_v57  ;;  %v4610_v59 = vmul.f32 -1.442695, %v3031_v57 }
0x122e   :  { %5892 = vpow2.f32 %v4610_v59 }
0x1236   :  { %v5891_v58 = vpop.eup %5890 }
0x1237   :  { %3041 = vrot.lane.b32.xlu0 %v5891_v58, %s6029_s3 }
0x1238   :  { %v5893_v60 = vpop.eup %5892 }
0x1239   :  { %v3035_v61 = vadd.f32 1.0, %v5893_v60 }
0x123b   :  { %5894 = vrcp.f32 %v3035_v61  ;;  %v3477_v61 = vld [vmem:[#allocation2 + $0x7] sm:$0x1] }
0x1245   :  { %v5895_v62 = vpop.eup %5894 }
0x1246   :  { %v3039_v4 = vmul.f32 %v5895_v62, %v6647_v3 }
0x12a9   :  { %v3042_v63 = vpop.permute.xlu0 %3041 }
0x12aa   :  { %v3044_v0 = vmul.f32 %v5895_v62, %v3042_v63 }
0x12ac   :  { %3046 = vrot.lane.b32.xlu1 %v3044_v0, %s6030_s4 }
0x131e   :  { %v3047_v5 = vpop.permute.xlu1 %3046 }
0x131f   :  { %v6650_v6 = vadd.f32 %v3047_v5, %v3039_v4 }
0x1321   :  { %5896 = vtanh.f32 %v6650_v6  ;;  %v3061_v47 = vsel %vm3056_vm12, %v6650_v6, %v6647_v3 }
0x132b   :  { %v5897_v7 = vpop.eup %5896 }
0x132c   :  { %3052 = vrot.lane.b32.xlu0 %v5897_v7, %s6029_s3 }
0x139e   :  { %v3053_v8 = vpop.permute.xlu0 %3052 }
0x139f   :  { %v3055_v10 = vmul.f32 %v5895_v62, %v3053_v8 }
0x13a1   :  { %v3062_v12 = vsel %vm3056_vm12, %v3055_v10, %v6594_v38 }
0x13a2   :  { %3064 = vrot.lane.b32.xlu1 %v3062_v12, %s6030_s4  ;;  %v3142_v13 = vrot.slane %v3062_v12, 1  ;;  %v3287_v16 = vrot.slane %v3062_v12, 2 }
0x13a4   :  { %3143 = vrot.lane.b32.xlu0 %v3142_v13, %s6030_s4 }
0x13a6   :  { %3288 = vrot.lane.b32.xlu1 %v3287_v16, %s6030_s4 }
0x1414   :  { %v3065_v17 = vpop.permute.xlu1 %3064 }
0x1415   :  { %3067 = vst.msk [vmem:[#allocation3 + $0x2] sm:$0x4] %vm612_vm5, %v3065_v17  ;;  %5300 = vmatmul.mubr.msk.f32.vlgmr.msra.gmra.mrb[22].mxu0 %vm212_vm6, %v3065_v17 }
0x1416   :  { %5712 = vmatpush3.bf16.msra.mxu0 %v6201_v21  ;;  %v3144_v18 = vpop.permute.xlu0 %3143  ;;  %5332 = vmatprep.mubr.msk.f32.mxu0 %vm6027_vm0, %v6028_v2 }
0x1417   :  { %5311 = vmatmul.mubr.msk.f32.vlgmr.msra.gmra.mrb[22].mxu1 %vm212_vm6, %v3144_v18  ;;  %5713 = vmatprep.subr.bf16.mxu0 %v6026_v1 }
0x1418   :  { %5706 = vmatpush3.bf16.msra.mxu1 %v6212_v26  ;;  %5321 = vmatprep.mubr.msk.f32.mxu1 %vm6027_vm0, %v6028_v2  ;;  %v3289_v19 = vpop.permute.xlu1 %3288 }
0x1419   :  { %5707 = vmatprep.subr.bf16.mxu1 %v6026_v1 }
0x141a   :  { %5715 = vmatpush3.bf16.msra.mxu0 %v6216_v27 }
0x141b   :  { %5716 = vmatprep.subr.bf16.mxu0 %v6026_v1 }
0x141c   :  { %5709 = vmatpush3.bf16.msra.mxu1 %v6223_v32 }
0x141d   :  { %5333 = vmatmul.mubr.msk.f32.vlgmr.msra.gmra.mrb[24].mxu0 %vm212_vm6, %v3289_v19  ;;  %5722 = vmatprep.subr.bf16.mxu1 %v6026_v1 }
0x141e   :  { %5718 = vmatpush3.bf16.msra.mxu0 %v6229_v33  ;;  %5343 = vmatprep.mubr.msk.f32.mxu0 %vm6027_vm0, %v6028_v2 }
0x141f   :  { %5322 = vmatmul.mubr.msk.f32.vlgmr.msra.gmra.mrb[22].mxu1 %vm212_vm6, %v3065_v17  ;;  %5719 = vmatprep.subr.bf16.mxu0 %v6026_v1 }
0x1420   :  { %5724 = vmatpush3.bf16.msra.mxu1 %v6163_v9  ;;  %5354 = vmatprep.mubr.msk.f32.mxu1 %vm6027_vm0, %v6028_v2 }
0x1421   :  { %5725 = vmatprep.subr.bf16.mxu1 %v6026_v1 }
0x1422   :  { %5721 = vmatpush3.bf16.msra.mxu0 %v6235_v36 }
0x1423   :  { %5728 = vmatprep.subr.bf16.mxu0 %v6026_v1 }
0x1424   :  { %5727 = vmatpush3.bf16.msra.mxu1 %v6178_v15 }
0x1425   :  { %5344 = vmatmul.mubr.msk.f32.vlgmr.msra.gmra.mrb[24].mxu0 %vm212_vm6, %v3144_v18  ;;  %5740 = vmatprep.subr.bf16.mxu1 %v6026_v1 }
0x1426   :  { %5730 = vmatpush3.bf16.msra.mxu0 %v6174_v14  ;;  %5365 = vmatprep.mubr.msk.f32.mxu0 %vm6027_vm0, %v6028_v2 }
0x1427   :  { %5731 = vmatprep.subr.bf16.mxu0 %v6026_v1 }
0x142a   :  { %5733 = vmatpush3.bf16.msra.mxu0 %v6195_v20 }
0x142b   :  { %5734 = vmatprep.subr.bf16.mxu0 %v6026_v1 }
0x14e8   :  { %v3137_v22 = vpop.f32.mrb[22].mxu0 }
0x14e9   :  { %v5301_v23 = vpop.f32.mrb[23].mxu0  ;;  %v3141_v28 = vadd.f32 %v3137_v22, %v3068_v24  ;;  %v6765_v24 = vadd.s32 8, %v6270_v11 }
0x14eb   :  { %vm3875_vm13 = vcmp.gt.s32.totalorder %v6765_v24, 8  ;;  %vm4284_vm14 = vcmp.gt.s32.totalorder %v6765_v24, 9 }
0x14f2   :  { %v3283_v25 = vpop.f32.mrb[22].mxu1 }
0x14f3   :  { %v3433_v29 = vrot.slane %v3283_v25, 7  ;;  %v5323_v30 = vpop.f32.mrb[23].mxu1 }
0x14f5   :  { %v3438_v31 = vsel %vm205_vm2, %v3141_v28, %v3433_v29 }
0x14f8   :  { %v3428_v34 = vpop.f32.mrb[24].mxu0 }
0x14f9   :  { %v3436_v35 = vrot.slane %v3428_v34, 6  ;;  %v5345_v37 = vpop.f32.mrb[25].mxu0 }
0x14fb   :  { %v3439_v38 = vsel %vm207_vm3, %v3438_v31, %v3436_v35 }
0x14fc   :  { %v3440_v39 = vadd.f32 %v3439_v38, %v6260_v55 }
0x14fe   :  { %5898 = vtanh.f32 %v3440_v39  ;;  %v4616_v41 = vmul.f32 -1.442695, %v3440_v39 }
0x1500   :  { %5900 = vpow2.f32 %v4616_v41 }
0x1508   :  { %v5899_v40 = vpop.eup %5898 }
0x1509   :  { %3450 = vrot.lane.b32.xlu0 %v5899_v40, %s6029_s3 }
0x150a   :  { %v5901_v42 = vpop.eup %5900 }
0x150b   :  { %v3444_v43 = vadd.f32 1.0, %v5901_v42 }
0x150d   :  { %5902 = vrcp.f32 %v3444_v43 }
0x1517   :  { %v5903_v44 = vpop.eup %5902 }
0x1518   :  { %v3448_v48 = vmul.f32 %v5903_v44, %v3061_v47 }
0x157b   :  { %v3451_v45 = vpop.permute.xlu0 %3450 }
0x157c   :  { %v3453_v46 = vmul.f32 %v5903_v44, %v3451_v45 }
0x157e   :  { %3455 = vrot.lane.b32.xlu1 %v3453_v46, %s6030_s4 }
0x15f0   :  { %v3456_v49 = vpop.permute.xlu1 %3455 }
0x15f1   :  { %v6706_v50 = vadd.f32 %v3456_v49, %v3448_v48 }
0x15f3   :  { %5904 = vtanh.f32 %v6706_v50 }
0x15fd   :  { %v5905_v51 = vpop.eup %5904 }
0x15fe   :  { %3461 = vrot.lane.b32.xlu0 %v5905_v51, %s6029_s3 }
0x1670   :  { %v3462_v52 = vpop.permute.xlu0 %3461 }
0x1671   :  { %v6710_v53 = vmul.f32 %v5903_v44, %v3462_v52 }
0x1673   :  { %3473 = vrot.lane.b32.xlu1 %v6710_v53, %s6030_s4  ;;  %v3551_v54 = vrot.slane %v6710_v53, 1  ;;  %v3696_v56 = vrot.slane %v6710_v53, 2 }
0x1675   :  { %3552 = vrot.lane.b32.xlu0 %v3551_v54, %s6030_s4 }
0x1677   :  { %3697 = vrot.lane.b32.xlu1 %v3696_v56, %s6030_s4 }
0x16e5   :  { %v3474_v57 = vpop.permute.xlu1 %3473 }
0x16e6   :  { %3476 = vst.msk [vmem:[#allocation3 + $0x3] sm:$0x4] %vm612_vm5, %v3474_v57  ;;  %5355 = vmatmul.mubr.msk.f32.vlgmr.msra.gmra.mrb[24].mxu1 %vm212_vm6, %v3474_v57 }
0x16e7   :  { %5742 = vmatpush3.bf16.msra.mxu1 %v6201_v21  ;;  %v3553_v58 = vpop.permute.xlu0 %3552  ;;  %5387 = vmatprep.mubr.msk.f32.mxu1 %vm6027_vm0, %v6028_v2 }
0x16e8   :  { %5366 = vmatmul.mubr.msk.f32.vlgmr.msra.gmra.mrb[26].mxu0 %vm212_vm6, %v3553_v58  ;;  %5743 = vmatprep.subr.bf16.mxu1 %v6026_v1 }
0x16e9   :  { %5736 = vmatpush3.bf16.msra.mxu0 %v6212_v26  ;;  %5376 = vmatprep.mubr.msk.f32.mxu0 %vm6027_vm0, %v6028_v2  ;;  %v3698_v59 = vpop.permute.xlu1 %3697 }
0x16ea   :  { %5737 = vmatprep.subr.bf16.mxu0 %v6026_v1 }
0x16eb   :  { %5745 = vmatpush3.bf16.msra.mxu1 %v6216_v27 }
0x16ec   :  { %5746 = vmatprep.subr.bf16.mxu1 %v6026_v1 }
0x16ed   :  { %5739 = vmatpush3.bf16.msra.mxu0 %v6223_v32 }
0x16ee   :  { %5388 = vmatmul.mubr.msk.f32.vlgmr.msra.gmra.mrb[26].mxu1 %vm212_vm6, %v3698_v59  ;;  %5752 = vmatprep.subr.bf16.mxu0 %v6026_v1 }
0x16ef   :  { %5748 = vmatpush3.bf16.msra.mxu1 %v6229_v33  ;;  %5398 = vmatprep.mubr.msk.f32.mxu1 %vm6027_vm0, %v6028_v2 }
0x16f0   :  { %5377 = vmatmul.mubr.msk.f32.vlgmr.msra.gmra.mrb[26].mxu0 %vm212_vm6, %v3474_v57  ;;  %5749 = vmatprep.subr.bf16.mxu1 %v6026_v1  ;;  %v4295_v57 = vld [vmem:[%s6862_s5] sm:$0xff] }
0x16f1   :  { %5754 = vmatpush3.bf16.msra.mxu0 %v6163_v9  ;;  %5409 = vmatprep.mubr.msk.f32.mxu0 %vm6027_vm0, %v6028_v2 }
0x16f2   :  { %5755 = vmatprep.subr.bf16.mxu0 %v6026_v1 }
0x16f3   :  { %5751 = vmatpush3.bf16.msra.mxu1 %v6235_v36 }
0x16f4   :  { %5758 = vmatprep.subr.bf16.mxu1 %v6026_v1 }
0x16f5   :  { %5757 = vmatpush3.bf16.msra.mxu0 %v6178_v15 }
0x16f6   :  { %5399 = vmatmul.mubr.msk.f32.vlgmr.msra.gmra.mrb[26].mxu1 %vm212_vm6, %v3553_v58  ;;  %5770 = vmatprep.subr.bf16.mxu0 %v6026_v1  ;;  %v4296_v58 = vld [vmem:[%s6862_s5 + $0x8] sm:$0xff] }
0x16f7   :  { %5760 = vmatpush3.bf16.msra.mxu1 %v6174_v14  ;;  %5420 = vmatprep.mubr.msk.f32.mxu1 %vm6027_vm0, %v6028_v2  ;;  %v5783_v59 = vpack.c.bf16 %v4296_v58, %v4295_v57 }
0x16f8   :  { %5761 = vmatprep.subr.bf16.mxu1 %v6026_v1 }
0x16fb   :  { %5763 = vmatpush3.bf16.msra.mxu1 %v6195_v20 }
0x16fc   :  { %5764 = vmatprep.subr.bf16.mxu1 %v6026_v1 }
0x17b9   :  { %v3546_v9 = vpop.f32.mrb[24].mxu1 }
0x17ba   :  { %v5356_v60 = vpop.f32.mrb[25].mxu1  ;;  %v3550_v15 = vadd.f32 %v3546_v9, %v3477_v61  ;;  %v4298_v9 = vld [vmem:[%s6862_s5 + $0x18] sm:$0xff] }
0x17c3   :  { %v3692_v62 = vpop.f32.mrb[26].mxu0 }
0x17c4   :  { %v3842_v63 = vrot.slane %v3692_v62, 7  ;;  %v5378_v0 = vpop.f32.mrb[27].mxu0 }
0x17c6   :  { %v3847_v3 = vsel %vm205_vm2, %v3550_v15, %v3842_v63 }
0x17c9   :  { %v3837_v4 = vpop.f32.mrb[26].mxu1 }
0x17ca   :  { %v3845_v14 = vrot.slane %v3837_v4, 6  ;;  %v5400_v5 = vpop.f32.mrb[27].mxu1 }
0x17cc   :  { %v3848_v6 = vsel %vm207_vm3, %v3847_v3, %v3845_v14  ;;  %v4382_v3 = vld [vmem:[%s6864_s7] sm:$0xff] }
0x17cd   :  { %v3849_v7 = vadd.f32 %v3848_v6, %v6260_v55  ;;  %v4629_v14 = vld [vmem:[%s6863_s6] ss:$0 sm:$0xff] }
0x17cf   :  { %5906 = vtanh.f32 %v3849_v7  ;;  %v4622_v8 = vmul.f32 -1.442695, %v3849_v7 }
0x17d1   :  { %5908 = vpow2.f32 %v4622_v8 }
0x17d9   :  { %v5907_v20 = vpop.eup %5906 }
0x17da   :  { %3859 = vrot.lane.b32.xlu0 %v5907_v20, %s6029_s3 }
0x17db   :  { %v5909_v10 = vpop.eup %5908 }
0x17dc   :  { %v3853_v12 = vadd.f32 1.0, %v5909_v10  ;;  %v4467_v10 = vld [vmem:[%s6866_s9] sm:$0xff] }
0x17de   :  { %5910 = vrcp.f32 %v3853_v12  ;;  %v4631_v12 = vld [vmem:[%s6865_s8] ss:$0 sm:$0xff] }
0x17e8   :  { %v5911_v13 = vpop.eup %5910 }
0x17e9   :  { %v3857_v18 = vmul.f32 %v5911_v13, %v6706_v50 }
0x184c   :  { %v3860_v16 = vpop.permute.xlu0 %3859 }
0x184d   :  { %v3862_v17 = vmul.f32 %v5911_v13, %v3860_v16 }
0x184f   :  { %3864 = vrot.lane.b32.xlu1 %v3862_v17, %s6030_s4 }
0x18c1   :  { %v3865_v19 = vpop.permute.xlu1 %3864 }
0x18c2   :  { %v6760_v22 = vadd.f32 %v3865_v19, %v3857_v18 }
0x18c4   :  { %5912 = vtanh.f32 %v6760_v22  ;;  %v3879_v52 = vsel %vm3875_vm13, %v6760_v22, %v6706_v50  ;;  %v4297_v50 = vld [vmem:[%s6862_s5 + $0x10] sm:$0xff] }
0x18c5   :  { %v5786_v60 = vpack.c.bf16 %v4298_v9, %v4297_v50  ;;  %v4633_v22 = vld [vmem:[#allocation4] ss:$0 sm:$0xff] }
0x18ce   :  { %v5913_v23 = vpop.eup %5912 }
0x18cf   :  { %3870 = vrot.lane.b32.xlu0 %v5913_v23, %s6029_s3 }
0x1941   :  { %v3871_v25 = vpop.permute.xlu0 %3870 }
0x1942   :  { %v3873_v28 = vmul.f32 %v5911_v13, %v3871_v25 }
0x1944   :  { %v6771_v29 = vsel %vm3875_vm13, %v3873_v28, %v6710_v53 }
0x1945   :  { %3882 = vrot.lane.b32.xlu1 %v6771_v29, %s6030_s4  ;;  %v3960_v30 = vrot.slane %v6771_v29, 1  ;;  %v4105_v31 = vrot.slane %v6771_v29, 2 }
0x1947   :  { %3961 = vrot.lane.b32.xlu0 %v3960_v30, %s6030_s4 }
0x1949   :  { %4106 = vrot.lane.b32.xlu1 %v4105_v31, %s6030_s4 }
0x19b7   :  { %v3883_v11 = vpop.permute.xlu1 %3882 }
0x19b8   :  { %3885 = vst.msk [vmem:[#allocation3 + $0x4] sm:$0x4] %vm612_vm5, %v3883_v11  ;;  %5410 = vmatmul.mubr.msk.f32.vlgmr.msra.gmra.mrb[28].mxu0 %vm212_vm6, %v3883_v11 }
0x19b9   :  { %5772 = vmatpush3.bf16.msra.mxu0 %v6201_v21  ;;  %v3962_v34 = vpop.permute.xlu0 %3961  ;;  %5442 = vmatprep.mubr.msk.f32.mxu0 %vm6027_vm0, %v6028_v2 }
0x19ba   :  { %5421 = vmatmul.mubr.msk.f32.vlgmr.msra.gmra.mrb[28].mxu1 %vm212_vm6, %v3962_v34  ;;  %5773 = vmatprep.subr.bf16.mxu0 %v6026_v1 }
0x19bb   :  { %5766 = vmatpush3.bf16.msra.mxu1 %v6212_v26  ;;  %5431 = vmatprep.mubr.msk.f32.mxu1 %vm6027_vm0, %v6028_v2  ;;  %v4107_v21 = vpop.permute.xlu1 %4106 }
0x19bc   :  { %5767 = vmatprep.subr.bf16.mxu1 %v6026_v1 }
0x19bd   :  { %5775 = vmatpush3.bf16.msra.mxu0 %v6216_v27 }
0x19be   :  { %5776 = vmatprep.subr.bf16.mxu0 %v6026_v1 }
0x19bf   :  { %5769 = vmatpush3.bf16.msra.mxu1 %v6223_v32  ;;  %v3886_v32 = vld [vmem:[#allocation2 + $0x7] sm:$0x1] }
0x19c0   :  { %5443 = vmatmul.mubr.msk.f32.vlgmr.msra.gmra.mrb[30].mxu0 %vm212_vm6, %v4107_v21  ;;  %5782 = vmatprep.subr.bf16.mxu1 %v6026_v1 }
0x19c1   :  { %5778 = vmatpush3.bf16.msra.mxu0 %v6229_v33  ;;  %5453 = vmatprep.mubr.msk.f32.mxu0 %vm6027_vm0, %v6028_v2 }
0x19c2   :  { %5432 = vmatmul.mubr.msk.f32.vlgmr.msra.gmra.mrb[28].mxu1 %vm212_vm6, %v3883_v11  ;;  %5779 = vmatprep.subr.bf16.mxu0 %v6026_v1 }
0x19c3   :  { %5464 = vmatprep.mubr.msk.f32.mxu1 %vm6027_vm0, %v6028_v2  ;;  %5784 = vmatpush3.bf16.msra.mxu1 %v5783_v59 }
0x19c4   :  { %5785 = vmatprep.subr.bf16.mxu1 %v6026_v1 }
0x19c5   :  { %5781 = vmatpush3.bf16.msra.mxu0 %v6235_v36 }
0x19c6   :  { %5788 = vmatprep.subr.bf16.mxu0 %v6026_v1  ;;  %v4383_v1 = vld [vmem:[%s6864_s7 + $0x8] sm:$0xff] }
0x19c7   :  { %5787 = vmatpush3.bf16.msra.mxu1 %v5786_v60  ;;  %v5789_v4 = vpack.c.bf16 %v4383_v1, %v4382_v3 }
0x19c8   :  { %5454 = vmatmul.mubr.msk.f32.vlgmr.msra.gmra.mrb[30].mxu0 %vm212_vm6, %v3962_v34 }
0x19c9   :  { %5471 = vmatprep.mubr.msk.f32.mxu0 %vm6027_vm0, %v6028_v2  ;;  %5790 = vmatpush3.bf16.msra.mxu0 %v5789_v4 }
0x19ca   :  { %5474 = vmatprep.subr.mxu0 %v6028_v2 }
0x1a8b   :  { %v3955_v26 = vpop.f32.mrb[28].mxu0 }
0x1a8c   :  { %v5411_v27 = vpop.f32.mrb[29].mxu0  ;;  %v3959_v35 = vadd.f32 %v3955_v26, %v3886_v32 }
0x1a95   :  { %v4101_v33 = vpop.f32.mrb[28].mxu1 }
0x1a96   :  { %v4251_v37 = vrot.slane %v4101_v33, 7  ;;  %v5433_v38 = vpop.f32.mrb[29].mxu1 }
0x1a98   :  { %v4256_v39 = vsel %vm205_vm2, %v3959_v35, %v4251_v37 }
0x1a9b   :  { %v4246_v40 = vpop.f32.mrb[30].mxu0 }
0x1a9c   :  { %v4254_v41 = vrot.slane %v4246_v40, 6  ;;  %v5455_v42 = vpop.f32.mrb[31].mxu0 }
0x1a9e   :  { %v4257_v36 = vsel %vm207_vm3, %v4256_v39, %v4254_v41  ;;  %vm4475_vm3 = vcmask 64512  }
0x1a9f   :  { %v4258_v43 = vadd.f32 %v4257_v36, %v6260_v55 }
0x1aa1   :  { %5914 = vtanh.f32 %v4258_v43  ;;  %v4628_v45 = vmul.f32 -1.442695, %v4258_v43 }
0x1aa3   :  { %5916 = vpow2.f32 %v4628_v45 }
0x1aab   :  { %v5915_v44 = vpop.eup %5914 }
0x1aac   :  { %4268 = vrot.lane.b32.xlu0 %v5915_v44, %s6029_s3 }
0x1aad   :  { %v5917_v46 = vpop.eup %5916 }
0x1aae   :  { %v4262_v47 = vadd.f32 1.0, %v5917_v46 }
0x1ab0   :  { %5918 = vrcp.f32 %v4262_v47 }
0x1aba   :  { %v5919_v48 = vpop.eup %5918 }
0x1abb   :  { %v4266_v55 = vmul.f32 %v5919_v48, %v3879_v52 }
0x1b1e   :  { %v4269_v49 = vpop.permute.xlu0 %4268 }
0x1b1f   :  { %v4271_v51 = vmul.f32 %v5919_v48, %v4269_v49 }
0x1b21   :  { %4273 = vrot.lane.b32.xlu1 %v4271_v51, %s6030_s4 }
0x1b93   :  { %v4274_v53 = vpop.permute.xlu1 %4273 }
0x1b94   :  { %v4276_v54 = vadd.f32 %v4274_v53, %v4266_v55 }
0x1b96   :  { %5920 = vtanh.f32 %v4276_v54 }
0x1ba0   :  { %v5921_v56 = vpop.eup %5920 }
0x1ba1   :  { %4279 = vrot.lane.b32.xlu0 %v5921_v56, %s6029_s3 }
0x1c13   :  { %v4280_v61 = vpop.permute.xlu0 %4279 }
0x1c14   :  { %v4282_v62 = vmul.f32 %v5919_v48, %v4280_v61 }
0x1c16   :  { %v4288_v15 = vsel %vm4284_vm14, %v4282_v62, %v6771_v29 }
0x1c17   :  { %4290 = vrot.lane.b32.xlu1 %v4288_v15, %s6030_s4 }
0x1c89   :  { %v4291_v63 = vpop.permute.xlu1 %4290 }
0x1c8a   :  { %4293 = vst.msk [vmem:[#allocation3 + $0x5] sm:$0x4] %vm612_vm5, %v4291_v63 }
0x1c91   :  { %v4294_v0 = vld [vmem:[#allocation3] sm:$0xff] }
0x1c92   :  { %5465 = vmatmul.mubr.msk.f32.vlgmr.msra.gmra.mrb[30].mxu1 %vm212_vm6, %v4294_v0 }
0x1d65   :  { %v4375_v5 = vpop.f32.mrb[30].mxu1 }
0x1d66   :  { %v4376_v6 = vadd.f32 %v4629_v14, %v4375_v5  ;;  %v5466_v7 = vpop.f32.mrb[31].mxu1 }
0x1d68   :  { %vm4379_vm15 = vcmp.gt.f32.partialorder %v4376_v6, 0.0  ;;  %v4380_v20 = vmul.f32 0.01, %v4376_v6 }
0x1d6a   :  { %v4381_v8 = vsel %vm4379_vm15, %v4376_v6, %v4380_v20 }
0x1d6b   :  { %5472 = vmatmul.mubr.msk.f32.vlgmr.msra.gmra.mrb[32].mxu0 %vm99_vm1, %v4381_v8 }
0x1d6c   :  { %5476 = vmatprep.mubr.msk.f32.mxu0 %vm6027_vm0, %v6028_v2  ;;  %5475 = vmatpush3.msra.mxu0 %v4467_v10  ;;  %vm4555_vm0 = vcmask 7168  }
0x1e3e   :  { %v4460_v13 = vpop.f32.mrb[32].mxu0 }
0x1e3f   :  { %v4461_v16 = vadd.f32 %v4631_v12, %v4460_v13  ;;  %v5473_v17 = vpop.f32.mrb[33].mxu0 }
0x1e41   :  { %vm4464_vm2 = vcmp.gt.f32.partialorder %v4461_v16, 0.0  ;;  %v4465_v18 = vmul.f32 0.01, %v4461_v16 }
0x1e43   :  { %v4466_v19 = vsel %vm4464_vm2, %v4461_v16, %v4465_v18 }
0x1e44   :  { %5477 = vmatmul.mubr.msk.f32.vlgmr.msra.gmra.mrb[34].mxu0 %vm4475_vm3, %v4466_v19 }
0x1f17   :  { %v4545_v23 = vpop.f32.mrb[34].mxu0 }
0x1f18   :  { %v4546_v2 = vadd.f32 %v4633_v22, %v4545_v23  ;;  %v5478_v24 = vpop.f32.mrb[35].mxu0 }
0x1f1a   :  { %v4635_v25 = vmul.f32 -1.442695, %v4546_v2 }
0x1f1c   :  { %5922 = vpow2.f32 %v4635_v25 }
0x1f26   :  { %v5923_v28 = vpop.eup %5922 }
0x1f27   :  { %v4552_v29 = vadd.f32 1.0, %v5923_v28 }
0x1f29   :  { %5924 = vrcp.f32 %v4552_v29 }
0x1f33   :  { %v5925_v30 = vpop.eup %5924 }
0x1f34   :  { %4556 = vst.msk [vmem:[%s6868_s11] sm:$0xff] %vm4555_vm0, %v5925_v30 }
0x1f35   :  { %4561 = vsyncpa [#allocation6], 1 }
0x1f36   :  { %4562 = vsyncpa [#allocation8], 1 }
0x1f37   :  { %4563 = vsyncpa [#allocation11], 1 }

</bundles_post_ra>
